<compile_context>
chip_gen: v7x
topology: tpu7x:2x2x1
jax: 0.10.0
libtpu: 0.0.40
codegen_flags: <defaults>
</compile_context>

<pallas_src>
import functools

import jax
import jax.numpy as jnp
from jax.experimental import pallas as pl
from jax.experimental.pallas import tpu as pltpu

# ----------------------------------------------------------------------------
# Tokenizer glue (string ops -> token ids).  TODO(synk): real HF tokenizer /
# pretrained ESM2 checkpoint loading has no Pallas equivalent; simulated here.
# ----------------------------------------------------------------------------
UNKNOWN = ("X", "B", "J", "Z", "O", "U")
_AA = "LAGVSERTIDPKQNFYMHWC"
CLS_ID, PAD_ID, EOS_ID, UNK_ID, MASK_ID = 0, 1, 2, 3, 32
VOCAB_SIZE = 33
_AA_TO_ID = {a: 4 + i for i, a in enumerate(_AA)}


class SimpleTokenizer:
    mask_token = "<mask>"

    def tokenize(self, seqs, max_length):
        ids, mask = [], []
        for seq in seqs:
            toks = [CLS_ID]
            i = 0
            while i < len(seq):
                if seq.startswith(self.mask_token, i):
                    toks.append(MASK_ID)
                    i += len(self.mask_token)
                else:
                    toks.append(_AA_TO_ID.get(seq[i], UNK_ID))
                    i += 1
            toks.append(EOS_ID)
            toks = toks[:max_length]
            am = [1] * len(toks) + [0] * (max_length - len(toks))
            toks = toks + [PAD_ID] * (max_length - len(toks))
            ids.append(toks)
            mask.append(am)
        return jnp.asarray(ids, jnp.int32), jnp.asarray(mask, jnp.int32)


# ----------------------------------------------------------------------------
# Tiling / VMEM helpers
# ----------------------------------------------------------------------------
def _pick_tile(n, candidates):
    """Largest candidate that evenly divides n; fall back to n (full block)."""
    for c in candidates:
        if c <= n and n % c == 0:
            return c
    return n


def _max_row_tile():
    # v5e/v6e have 128 MiB physical VMEM -> 512-row tiles get near HBM roofline.
    # v7x has 64 MiB -> stay at 256 so resident weights + activation tiles fit.
    try:
        kind = jax.devices()[0].device_kind.lower()
    except Exception:
        return 256
    return 512 if ("v5" in kind or "v6" in kind) else 256


def _row_tile(m):
    maxt = _max_row_tile()
    cands = tuple(t for t in (512, 256, 128, 64, 32, 16, 8) if t <= maxt)
    return _pick_tile(m, cands)


def _col_tile(n, threshold=2048,
              candidates=(2048, 1536, 1280, 1024, 768, 640, 512, 384, 256)):
    """Lane-dim tile (multiple of 128) for wide weight matrices; full if small."""
    if n <= threshold:
        return n
    return _pick_tile(n, candidates)


def _vmem_limit(resident_bytes):
    # Default scoped VMEM is only 16 MiB (v5e) / 32 MiB (v6e, v7x); size the limit
    # explicitly from the actual resident blocks with headroom.
    need = int(resident_bytes * 1.25) + (2 << 20)
    return int(max(32 << 20, min(need, 128 << 20)))


# ----------------------------------------------------------------------------
# Kernel 1: fused LayerNorm + QKV projection -> bf16 output
#           (xln never round-trips HBM; 3H output optionally N-tiled)
# ----------------------------------------------------------------------------
def _ln_qkv_kernel(x_ref, g_ref, b_ref, w_ref, bias_ref, o_ref, *, eps):
    x = x_ref[...].astype(jnp.float32)
    mean = jnp.mean(x, axis=-1, keepdims=True)
    var = jnp.mean((x - mean) ** 2, axis=-1, keepdims=True)
    xln = (x - mean) * jax.lax.rsqrt(var + eps)
    xln = xln * g_ref[...] + b_ref[...]
    acc = jnp.dot(xln.astype(jnp.bfloat16), w_ref[...],
                  preferred_element_type=jnp.float32)
    o_ref[...] = (acc + bias_ref[...]).astype(o_ref.dtype)


def ln_qkv(x, gamma, beta, wqkv, bqkv, *, eps=1e-5):
    m, h = x.shape
    n = wqkv.shape[1]
    bm = _row_tile(m)
    tn = _col_tile(n)
    # double-buffered resident blocks (x, gamma/beta, w tile, bias tile, out tile)
    resident = 2 * (bm * h * 4 + 2 * h * 4 + h * tn * 2 + tn * 4 + bm * tn * 2)
    return pl.pallas_call(
        functools.partial(_ln_qkv_kernel, eps=eps),
        out_shape=jax.ShapeDtypeStruct((m, n), jnp.bfloat16),
        grid=(m // bm, n // tn),
        in_specs=[
            pl.BlockSpec((bm, h), lambda i, j: (i, 0)),
            pl.BlockSpec((1, h), lambda i, j: (0, 0)),
            pl.BlockSpec((1, h), lambda i, j: (0, 0)),
            pl.BlockSpec((h, tn), lambda i, j: (0, j)),
            pl.BlockSpec((1, tn), lambda i, j: (0, j)),
        ],
        out_specs=pl.BlockSpec((bm, tn), lambda i, j: (i, j)),
        compiler_params=pltpu.CompilerParams(
            dimension_semantics=("parallel", "parallel"),
            vmem_limit_bytes=_vmem_limit(resident)),
        cost_estimate=pl.CostEstimate(
            flops=2 * m * h * n + 8 * m * h,
            transcendentals=m,
            bytes_accessed=4 * m * h + 2 * (m * n + h * n) + 4 * n),
    )(x, gamma.reshape(1, h), beta.reshape(1, h), wqkv, bqkv.reshape(1, n))


# ----------------------------------------------------------------------------
# Kernel 2: attention over a lane-dense bf16 [S, 3H] slab, query-tiled.
#   per-head ref slices (no full-slab f32 upcast), rotary with pre-signed sin,
#   key-padding mask, softmax (approx reciprocal), per-head context accumulated
#   into a VMEM scratch, fused output projection + residual add in [B, S, H].
# ----------------------------------------------------------------------------
def _attn_kernel(qkv_ref, res_ref, cos_ref, sin_ref, bias_ref, wo_ref, bo_ref,
                 o_ref, ctx_ref, *, heads, head_dim, hidden, scale, q_tile):
    d2 = head_dim // 2
    qoff = pl.program_id(1) * q_tile
    if q_tile % 8 == 0:
        qoff = pl.multiple_of(qoff, q_tile)
    bias = bias_ref[0]                                  # [1, S] additive key mask

    def rope(xh, cos, sin):
        # rotate-half with the +/- sign pre-folded into the sin table.
        return xh * cos + jnp.concatenate([xh[:, d2:], xh[:, :d2]], axis=-1) * sin

    for hh in range(heads):
        sl = slice(hh * head_dim, (hh + 1) * head_dim)
        cos_q = cos_ref[pl.ds(qoff, q_tile), sl]
        sin_q = sin_ref[pl.ds(qoff, q_tile), sl]
        # per-head ref slices: only q/k upcast to f32 (for RoPE); v stays bf16.
        qh = qkv_ref[0, pl.ds(qoff, q_tile), sl].astype(jnp.float32)
        kh = qkv_ref[0, :, hidden + hh * head_dim:
                     hidden + (hh + 1) * head_dim].astype(jnp.float32)
        vh = qkv_ref[0, :, 2 * hidden + hh * head_dim:
                     2 * hidden + (hh + 1) * head_dim]
        qh = (rope(qh, cos_q, sin_q) * scale).astype(jnp.bfloat16)
        kh = rope(kh, cos_ref[:, sl], sin_ref[:, sl]).astype(jnp.bfloat16)
        s = jax.lax.dot_general(qh, kh, (((1,), (1,)), ((), ())),
                                preferred_element_type=jnp.float32) + bias  # [tq,S]
        mx = jnp.max(s, axis=-1, keepdims=True)
        p = jnp.exp(s - mx)
        p = p * pl.reciprocal(jnp.sum(p, axis=-1, keepdims=True), approx=True)
        # accumulate head context at its static lane offset (no concat, bounded
        # live ranges across the unrolled head loop).
        ctx_ref[:, sl] = jnp.dot(p.astype(jnp.bfloat16), vh,
                                 preferred_element_type=jnp.float32)

    attn = jnp.dot(ctx_ref[...].astype(jnp.bfloat16), wo_ref[...],
                   preferred_element_type=jnp.float32) + bo_ref[...]
    o_ref[0] = (res_ref[0] + attn).astype(o_ref.dtype)


def attention_block(qkv, res, cos, sin, bias, wo, bo, *, heads, head_dim):
    # qkv: [B, S, 3H] bf16; res: [B, S, H] f32 residual; bias: [B, 1, S] f32
    B, S, _ = qkv.shape
    H = heads * head_dim
    tq = _pick_tile(S, (256, 128, 64, 32, 16, 8))   # bounds the [tq, S] f32 temps
    scale = head_dim ** -0.5
    resident = 2 * (S * 3 * H * 2 + tq * H * 4 + 2 * S * H * 4 + S * 4
                    + H * H * 2 + H * 4 + tq * H * 4)
    resident += tq * H * 4 + 4 * tq * S * 4 + 6 * S * head_dim * 4
    return pl.pallas_call(
        functools.partial(_attn_kernel, heads=heads, head_dim=head_dim,
                          hidden=H, scale=scale, q_tile=tq),
        out_shape=jax.ShapeDtypeStruct((B, S, H), jnp.float32),
        grid=(B, S // tq),
        in_specs=[
            pl.BlockSpec((1, S, 3 * H), lambda b, q: (b, 0, 0)),   # qkv (bf16)
            pl.BlockSpec((1, tq, H), lambda b, q: (b, q, 0)),      # residual (f32)
            pl.BlockSpec((S, H), lambda b, q: (0, 0)),             # cos, lane-dense
            pl.BlockSpec((S, H), lambda b, q: (0, 0)),             # signed sin
            pl.BlockSpec((1, 1, S), lambda b, q: (b, 0, 0)),       # key-padding bias
            pl.BlockSpec((H, H), lambda b, q: (0, 0)),             # wo (bf16)
            pl.BlockSpec((1, H), lambda b, q: (0, 0)),             # bo
        ],
        out_specs=pl.BlockSpec((1, tq, H), lambda b, q: (b, q, 0)),
        scratch_shapes=[pltpu.VMEM((tq, H), jnp.float32)],         # per-head context
        compiler_params=pltpu.CompilerParams(
            dimension_semantics=("parallel", "parallel"),
            vmem_limit_bytes=_vmem_limit(resident)),
        cost_estimate=pl.CostEstimate(
            flops=4 * B * S * S * H + 2 * B * S * H * H,
            transcendentals=B * heads * S * S,
            bytes_accessed=2 * B * S * 3 * H + 8 * B * S * H + 2 * H * H),
    )(qkv, res, cos, sin, bias, wo, bo.reshape(1, H))


# ----------------------------------------------------------------------------
# Kernel 3: fused LayerNorm + FFN (GEMM -> GELU -> GEMM) + residual,
#           F dimension tiled on a reduction grid axis with a VMEM accumulator.
# ----------------------------------------------------------------------------
def _ffn_kernel(x_ref, g_ref, b_ref, w1_ref, b1_ref, w2_ref, b2_ref, o_ref,
                xln_ref, acc_ref, *, eps):
    j = pl.program_id(1)

    @pl.when(j == 0)
    def _():
        x = x_ref[...].astype(jnp.float32)
        mean = jnp.mean(x, axis=-1, keepdims=True)
        var = jnp.mean((x - mean) ** 2, axis=-1, keepdims=True)
        xln = (x - mean) * jax.lax.rsqrt(var + eps)
        xln_ref[...] = (xln * g_ref[...] + b_ref[...]).astype(jnp.bfloat16)
        acc_ref[...] = jnp.zeros_like(acc_ref)

    h1 = jnp.dot(xln_ref[...], w1_ref[...],
                 preferred_element_type=jnp.float32) + b1_ref[...]
    # tanh-approx GELU in f32. TODO(synk): ESM2 uses exact erf-GELU.
    h1 = 0.5 * h1 * (1.0 + jnp.tanh(0.7978845608028654 *
                                    (h1 + 0.044715 * h1 * h1 * h1)))
    acc_ref[...] += jnp.dot(h1.astype(jnp.bfloat16), w2_ref[...],
                            preferred_element_type=jnp.float32)

    @pl.when(j == pl.num_programs(1) - 1)
    def _():
        o_ref[...] = (x_ref[...].astype(jnp.float32) + acc_ref[...]
                      + b2_ref[...]).astype(o_ref.dtype)


def ffn_block(x, gamma, beta, w1, b1, w2, b2, *, eps=1e-5):
    m, h = x.shape
    f = w1.shape[1]
    bm = _row_tile(m)
    tf = _col_tile(f)   # the [bm, F] intermediate never materializes in full
    resident = 2 * (bm * h * 4 + 2 * h * 4 + h * tf * 2 + tf * 4 + tf * h * 2
                    + h * 4 + bm * h * 4)
    resident += bm * h * 2 + bm * h * 4 + 2 * bm * tf * 4
    return pl.pallas_call(
        functools.partial(_ffn_kernel, eps=eps),
        out_shape=jax.ShapeDtypeStruct((m, h), jnp.float32),
        grid=(m // bm, f // tf),
        in_specs=[
            pl.BlockSpec((bm, h), lambda i, j: (i, 0)),
            pl.BlockSpec((1, h), lambda i, j: (0, 0)),
            pl.BlockSpec((1, h), lambda i, j: (0, 0)),
            pl.BlockSpec((h, tf), lambda i, j: (0, j)),
            pl.BlockSpec((1, tf), lambda i, j: (0, j)),
            pl.BlockSpec((tf, h), lambda i, j: (j, 0)),
            pl.BlockSpec((1, h), lambda i, j: (0, 0)),
        ],
        out_specs=pl.BlockSpec((bm, h), lambda i, j: (i, 0)),
        scratch_shapes=[pltpu.VMEM((bm, h), jnp.bfloat16),    # cached xln
                        pltpu.VMEM((bm, h), jnp.float32)],    # f32 accumulator
        compiler_params=pltpu.CompilerParams(
            dimension_semantics=("parallel", "arbitrary"),
            vmem_limit_bytes=_vmem_limit(resident)),
        cost_estimate=pl.CostEstimate(
            flops=4 * m * h * f + 8 * m * h,
            transcendentals=m * f + m,
            bytes_accessed=8 * m * h + 4 * h * f),
    )(x, gamma.reshape(1, h), beta.reshape(1, h), w1, b1.reshape(1, f),
      w2, b2.reshape(1, h))


# ----------------------------------------------------------------------------
# Kernel 4: final LayerNorm
# TODO(synk): could be folded into the last layer's ffn_block for tiny configs.
# ----------------------------------------------------------------------------
def _layernorm_kernel(x_ref, g_ref, b_ref, o_ref, *, eps):
    x = x_ref[...].astype(jnp.float32)
    mean = jnp.mean(x, axis=-1, keepdims=True)
    var = jnp.mean((x - mean) ** 2, axis=-1, keepdims=True)
    y = (x - mean) * jax.lax.rsqrt(var + eps)
    o_ref[...] = (y * g_ref[...] + b_ref[...]).astype(o_ref.dtype)


def layernorm(x, gamma, beta, *, eps=1e-5):
    m, h = x.shape
    bm = _row_tile(m)
    resident = 2 * (2 * bm * h * 4 + 2 * h * 4)
    return pl.pallas_call(
        functools.partial(_layernorm_kernel, eps=eps),
        out_shape=jax.ShapeDtypeStruct((m, h), jnp.float32),
        grid=(m // bm,),
        in_specs=[
            pl.BlockSpec((bm, h), lambda i: (i, 0)),
            pl.BlockSpec((1, h), lambda i: (0, 0)),
            pl.BlockSpec((1, h), lambda i: (0, 0)),
        ],
        out_specs=pl.BlockSpec((bm, h), lambda i: (i, 0)),
        compiler_params=pltpu.CompilerParams(
            dimension_semantics=("parallel",),
            vmem_limit_bytes=_vmem_limit(resident)),
    )(x, gamma.reshape(1, h), beta.reshape(1, h))


# ----------------------------------------------------------------------------
# Model: deterministic synthetic parameters (stacked per-layer) + forward pass
# ----------------------------------------------------------------------------
def init_params(key, vocab, hidden, ffn, layers):
    std = 0.02
    k = jax.random.split(key, 6)

    def nrm(kk, shape):
        return jax.random.normal(kk, shape, jnp.float32) * std

    return {
        "embed": nrm(k[0], (vocab, hidden)),
        "lnf_g": jnp.ones((hidden,), jnp.float32),
        "lnf_b": jnp.zeros((hidden,), jnp.float32),
        "layers": {
            "ln1_g": jnp.ones((layers, hidden), jnp.float32),
            "ln1_b": jnp.zeros((layers, hidden), jnp.float32),
            # Q/K/V fused into one [H, 3H] weight; GEMM weights stored bf16.
            "wqkv": nrm(k[1], (layers, hidden, 3 * hidden)).astype(jnp.bfloat16),
            "bqkv": jnp.zeros((layers, 3 * hidden), jnp.float32),
            "wo": nrm(k[2], (layers, hidden, hidden)).astype(jnp.bfloat16),
            "bo": jnp.zeros((layers, hidden), jnp.float32),
            "ln2_g": jnp.ones((layers, hidden), jnp.float32),
            "ln2_b": jnp.zeros((layers, hidden), jnp.float32),
            "w1": nrm(k[3], (layers, hidden, ffn)).astype(jnp.bfloat16),
            "b1": jnp.zeros((layers, ffn), jnp.float32),
            "w2": nrm(k[4], (layers, ffn, hidden)).astype(jnp.bfloat16),
            "b2": jnp.zeros((layers, hidden), jnp.float32),
        },
    }


def rotary_tables(seq_len, head_dim, heads):
    """Lane-dense [S, NH*Dh] cos / pre-signed sin tables (identical per head)."""
    inv_freq = 1.0 / (10000.0 ** (jnp.arange(0, head_dim, 2, dtype=jnp.float32)
                                  / head_dim))
    t = jnp.arange(seq_len, dtype=jnp.float32)
    freqs = jnp.einsum("s,d->sd", t, inv_freq)
    emb = jnp.concatenate([freqs, freqs], axis=-1)                   # [S, Dh]
    # Fold the rotate-half sign pattern [-1,...,-1,+1,...,+1] into sin so the
    # kernel computes rot(x) = x*cos + swap_halves(x)*sin_signed with no negation.
    sign = jnp.concatenate([-jnp.ones((head_dim // 2,), jnp.float32),
                            jnp.ones((head_dim // 2,), jnp.float32)])
    cos = jnp.tile(jnp.cos(emb), (1, heads))                         # [S, NH*Dh]
    sin = jnp.tile(jnp.sin(emb) * sign, (1, heads))                  # [S, NH*Dh]
    return cos, sin


@functools.partial(jax.jit, static_argnames=("hidden", "heads"))
def encoder_forward(params, token_ids, attn_mask, *, hidden, heads):
    B, S = token_ids.shape
    Dh = hidden // heads
    # TODO(synk): ESM2 token-dropout mask scaling of embeddings is omitted.
    h = jnp.take(params["embed"], token_ids, axis=0)            # [B, S, H] f32
    bias = ((1.0 - attn_mask.astype(jnp.float32)) * -1e9).reshape(B, 1, S)
    cos, sin_signed = rotary_tables(S, Dh, heads)                # [S, H] lane-dense

    def layer_step(h, lp):
        x = h.reshape(B * S, hidden)
        # bf16 qkv between kernels: widest inter-kernel activation at half bandwidth.
        qkv = ln_qkv(x, lp["ln1_g"], lp["ln1_b"], lp["wqkv"], lp["bqkv"])
        h1 = attention_block(qkv.reshape(B, S, 3 * hidden), h, cos, sin_signed,
                             bias, lp["wo"], lp["bo"], heads=heads, head_dim=Dh)
        h2 = ffn_block(h1.reshape(B * S, hidden), lp["ln2_g"], lp["ln2_b"],
                       lp["w1"], lp["b1"], lp["w2"], lp["b2"])
        return h2.reshape(B, S, hidden), None

    h, _ = jax.lax.scan(layer_step, h, params["layers"])
    x = layernorm(h.reshape(B * S, hidden), params["lnf_g"], params["lnf_b"])
    return x.reshape(B, S, hidden)  # last hidden states (batch, max_length, hidden)


class ProteinSeqEncoder:
    """JAX/Pallas re-implementation of the PyTorch ProteinSeqEncoder forward."""

    def __init__(self, hidden=32, heads=2, ffn=64, layers=2, seed=0):
        self._hidden = hidden
        self._heads = heads
        self.tokenizer = SimpleTokenizer()
        self.params = init_params(jax.random.PRNGKey(seed), VOCAB_SIZE, hidden,
                                  ffn, layers)

    @property
    def hidden_size(self):
        return self._hidden

    def unknown_to_mask(self, seqs):
        new_seqs = []
        for seq in seqs:
            for unk in UNKNOWN:
                seq = seq.replace(unk, self.tokenizer.mask_token)
            new_seqs.append(seq)
        return new_seqs

    def encode(self, seqs, max_length=15):
        seqs = self.unknown_to_mask(seqs)
        token_ids, attn_mask = self.tokenizer.tokenize(seqs, max_length)
        return encoder_forward(self.params, token_ids, attn_mask,
                               hidden=self._hidden, heads=self._heads)

    def __call__(self, seqs, max_length=15):
        return self.encode(seqs, max_length=max_length)


if __name__ == "__main__":
    # small, deterministic example: batch=2, max_length=16, hidden=32, heads=2
    enc = ProteinSeqEncoder(hidden=32, heads=2, ffn=64, layers=2, seed=0)
    seqs = ["MKTAYIAKQR", "GAVLXSERT"]   # 'X' gets replaced by <mask>
    out = enc(seqs, max_length=16)
    out = jax.block_until_ready(out)
    assert out.shape == (2, 16, enc.hidden_size), out.shape
    assert bool(jnp.all(jnp.isfinite(out)))
    print("KERNEL_OK")
</pallas_src>

<mosaic_0001>
module attributes {stable_mosaic.version = 11 : i64} {
  func.func @_ln_qkv_kernel(%arg0: i32, %arg1: i32, %arg2: memref<32x32xf32, #tpu.memory_space<vmem>>, %arg3: memref<1x32xf32, #tpu.memory_space<vmem>>, %arg4: memref<1x32xf32, #tpu.memory_space<vmem>>, %arg5: memref<32x96xbf16, #tpu.memory_space<vmem>>, %arg6: memref<1x96xf32, #tpu.memory_space<vmem>>, %arg7: memref<32x96xbf16, #tpu.memory_space<vmem>>) attributes {dimension_semantics = [#tpu.dimension_semantics<parallel>, #tpu.dimension_semantics<parallel>], iteration_bounds = array<i64: 1, 1>, scalar_prefetch = 0 : i64, scratch_operands = 0 : i64, tpu.core_type = #tpu.core_type<tc>, window_params = [{transform_indices = @transform_0, window_bounds = array<i64: 32, 32>}, {pipeline_mode = #tpu.pipeline_mode<synchronous>, transform_indices = @transform_1, window_bounds = array<i64: 1, 32>}, {pipeline_mode = #tpu.pipeline_mode<synchronous>, transform_indices = @transform_2, window_bounds = array<i64: 1, 32>}, {transform_indices = @transform_3, window_bounds = array<i64: 32, 96>}, {transform_indices = @transform_4, window_bounds = array<i64: 1, 96>}, {transform_indices = @transform_5, window_bounds = array<i64: 32, 96>}]} {
    %c0 = arith.constant 0 : index
    %c0_0 = arith.constant 0 : index
    %0 = vector.load %arg2[%c0, %c0_0] : memref<32x32xf32, #tpu.memory_space<vmem>>, vector<32x32xf32>
    %cst = arith.constant dense<0.000000e+00> : vector<32xf32>
    %1 = vector.multi_reduction <add>, %0, %cst [1] : vector<32x32xf32> to vector<32xf32>
    %2 = vector.shape_cast %1 : vector<32xf32> to vector<32x1xf32>
    %cst_1 = arith.constant 3.200000e+01 : f32
    %3 = vector.broadcast %cst_1 : f32 to vector<32x1xf32>
    %4 = arith.divf %2, %3 : vector<32x1xf32>
    %5 = vector.broadcast %4 : vector<32x1xf32> to vector<32x32xf32>
    %6 = arith.subf %0, %5 : vector<32x32xf32>
    %7 = arith.mulf %6, %6 : vector<32x32xf32>
    %cst_2 = arith.constant dense<0.000000e+00> : vector<32xf32>
    %8 = vector.multi_reduction <add>, %7, %cst_2 [1] : vector<32x32xf32> to vector<32xf32>
    %9 = vector.shape_cast %8 : vector<32xf32> to vector<32x1xf32>
    %cst_3 = arith.constant 3.200000e+01 : f32
    %10 = vector.broadcast %cst_3 : f32 to vector<32x1xf32>
    %11 = arith.divf %9, %10 : vector<32x1xf32>
    %12 = vector.broadcast %4 : vector<32x1xf32> to vector<32x32xf32>
    %13 = arith.subf %0, %12 : vector<32x32xf32>
    %cst_4 = arith.constant 9.99999974E-6 : f32
    %14 = vector.broadcast %cst_4 : f32 to vector<32x1xf32>
    %15 = arith.addf %11, %14 : vector<32x1xf32>
    %16 = math.rsqrt %15 : vector<32x1xf32>
    %17 = vector.broadcast %16 : vector<32x1xf32> to vector<32x32xf32>
    %18 = arith.mulf %13, %17 : vector<32x32xf32>
    %c0_5 = arith.constant 0 : index
    %c0_6 = arith.constant 0 : index
    %19 = vector.load %arg3[%c0_5, %c0_6] : memref<1x32xf32, #tpu.memory_space<vmem>>, vector<1x32xf32>
    %20 = vector.broadcast %19 : vector<1x32xf32> to vector<32x32xf32>
    %21 = arith.mulf %18, %20 : vector<32x32xf32>
    %c0_7 = arith.constant 0 : index
    %c0_8 = arith.constant 0 : index
    %22 = vector.load %arg4[%c0_7, %c0_8] : memref<1x32xf32, #tpu.memory_space<vmem>>, vector<1x32xf32>
    %23 = vector.broadcast %22 : vector<1x32xf32> to vector<32x32xf32>
    %24 = arith.addf %21, %23 : vector<32x32xf32>
    %25 = arith.truncf %24 : vector<32x32xf32> to vector<32x32xbf16>
    %c0_9 = arith.constant 0 : index
    %c0_10 = arith.constant 0 : index
    %26 = vector.load %arg5[%c0_9, %c0_10] : memref<32x96xbf16, #tpu.memory_space<vmem>>, vector<32x96xbf16>
    %cst_11 = arith.constant dense<0.000000e+00> : vector<32x96xf32>
    %27 = tpu.matmul %25, %26, %cst_11 {dimension_numbers = #tpu.dot_dimension_numbers<[1], [0], [0], [1], [0, 0, 1, 1], [], []>} : vector<32x32xbf16>, vector<32x96xbf16>, vector<32x96xf32> -> vector<32x96xf32>
    %c0_12 = arith.constant 0 : index
    %c0_13 = arith.constant 0 : index
    %28 = vector.load %arg6[%c0_12, %c0_13] : memref<1x96xf32, #tpu.memory_space<vmem>>, vector<1x96xf32>
    %29 = vector.broadcast %28 : vector<1x96xf32> to vector<32x96xf32>
    %30 = arith.addf %27, %29 : vector<32x96xf32>
    %31 = arith.truncf %30 : vector<32x96xf32> to vector<32x96xbf16>
    %c0_14 = arith.constant 0 : index
    %c0_15 = arith.constant 0 : index
    %32 = vector.load %arg7[%c0_14, %c0_15] : memref<32x96xbf16, #tpu.memory_space<vmem>>, vector<32x96xbf16>
    tpu.vector_store %arg7[%c0_14, %c0_15], %31 {strides = array<i32>} : memref<32x96xbf16, #tpu.memory_space<vmem>>, vector<32x96xbf16>,
    return
  }
  func.func @transform_0(%arg0: i32, %arg1: i32) -> (i32, i32) {
    %c0_i32 = arith.constant 0 : i32
    %c0_i32_0 = arith.constant 0 : i32
    return %arg0, %c0_i32 : i32, i32
  }
  func.func @transform_1(%arg0: i32, %arg1: i32) -> (i32, i32) {
    %c0_i32 = arith.constant 0 : i32
    %c0_i32_0 = arith.constant 0 : i32
    %c0_i32_1 = arith.constant 0 : i32
    return %c0_i32, %c0_i32_0 : i32, i32
  }
  func.func @transform_2(%arg0: i32, %arg1: i32) -> (i32, i32) {
    %c0_i32 = arith.constant 0 : i32
    %c0_i32_0 = arith.constant 0 : i32
    %c0_i32_1 = arith.constant 0 : i32
    return %c0_i32, %c0_i32_0 : i32, i32
  }
  func.func @transform_3(%arg0: i32, %arg1: i32) -> (i32, i32) {
    %c0_i32 = arith.constant 0 : i32
    %c0_i32_0 = arith.constant 0 : i32
    return %c0_i32, %arg1 : i32, i32
  }
  func.func @transform_4(%arg0: i32, %arg1: i32) -> (i32, i32) {
    %c0_i32 = arith.constant 0 : i32
    %c0_i32_0 = arith.constant 0 : i32
    return %c0_i32, %arg1 : i32, i32
  }
  func.func @transform_5(%arg0: i32, %arg1: i32) -> (i32, i32) {
    %c0_i32 = arith.constant 0 : i32
    return %arg0, %arg1 : i32, i32
  }
}

module attributes {stable_mosaic.version = 11 : i64} {
  func.func @_attn_kernel(%arg0: i32, %arg1: i32, %arg2: memref<1x16x96xbf16, #tpu.memory_space<vmem>>, %arg3: memref<1x16x32xf32, #tpu.memory_space<vmem>>, %arg4: memref<16x32xf32, #tpu.memory_space<vmem>>, %arg5: memref<16x32xf32, #tpu.memory_space<vmem>>, %arg6: memref<1x1x16xf32, #tpu.memory_space<vmem>>, %arg7: memref<32x32xbf16, #tpu.memory_space<vmem>>, %arg8: memref<1x32xf32, #tpu.memory_space<vmem>>, %arg9: memref<1x16x32xf32, #tpu.memory_space<vmem>>, %arg10: memref<16x32xf32, #tpu.memory_space<vmem>>) attributes {dimension_semantics = [#tpu.dimension_semantics<parallel>, #tpu.dimension_semantics<parallel>], iteration_bounds = array<i64: 2, 1>, scalar_prefetch = 0 : i64, scratch_operands = 1 : i64, tpu.core_type = #tpu.core_type<tc>, window_params = [{transform_indices = @transform_0, window_bounds = array<i64: 1, 16, 96>}, {transform_indices = @transform_1, window_bounds = array<i64: 1, 16, 32>}, {pipeline_mode = #tpu.pipeline_mode<synchronous>, transform_indices = @transform_2, window_bounds = array<i64: 16, 32>}, {pipeline_mode = #tpu.pipeline_mode<synchronous>, transform_indices = @transform_3, window_bounds = array<i64: 16, 32>}, {transform_indices = @transform_4, window_bounds = array<i64: 1, 1, 16>}, {pipeline_mode = #tpu.pipeline_mode<synchronous>, transform_indices = @transform_5, window_bounds = array<i64: 32, 32>}, {pipeline_mode = #tpu.pipeline_mode<synchronous>, transform_indices = @transform_6, window_bounds = array<i64: 1, 32>}, {transform_indices = @transform_7, window_bounds = array<i64: 1, 16, 32>}]} {
    %c16_i32 = arith.constant 16 : i32
    %0 = arith.muli %arg1, %c16_i32 : i32
    %1 = tpu.assume_multiple %0, 16 : i32
    %c0 = arith.constant 0 : index
    %c0_0 = arith.constant 0 : index
    %c0_1 = arith.constant 0 : index
    %2 = vector.load %arg6[%c0, %c0_0, %c0_1] : memref<1x1x16xf32, #tpu.memory_space<vmem>>, vector<1x1x16xf32>
    %3 = vector.shape_cast %2 : vector<1x1x16xf32> to vector<1x16xf32>
    %4 = arith.index_cast %1 : i32 to index
    %c0_2 = arith.constant 0 : index
    %5 = vector.load %arg4[%4, %c0_2] : memref<16x32xf32, #tpu.memory_space<vmem>>, vector<16x16xf32>
    %6 = arith.index_cast %1 : i32 to index
    %c0_3 = arith.constant 0 : index
    %7 = vector.load %arg5[%6, %c0_3] : memref<16x32xf32, #tpu.memory_space<vmem>>, vector<16x16xf32>
    %c0_4 = arith.constant 0 : index
    %8 = arith.index_cast %1 : i32 to index
    %c0_5 = arith.constant 0 : index
    %9 = vector.load %arg2[%c0_4, %8, %c0_5] : memref<1x16x96xbf16, #tpu.memory_space<vmem>>, vector<1x16x16xbf16>
    %10 = vector.shape_cast %9 : vector<1x16x16xbf16> to vector<16x16xbf16>
    %11 = arith.extf %10 : vector<16x16xbf16> to vector<16x16xf32>
    %c0_6 = arith.constant 0 : index
    %c0_7 = arith.constant 0 : index
    %c32 = arith.constant 32 : index
    %12 = vector.load %arg2[%c0_6, %c0_7, %c32] : memref<1x16x96xbf16, #tpu.memory_space<vmem>>, vector<1x16x16xbf16>
    %13 = vector.shape_cast %12 : vector<1x16x16xbf16> to vector<16x16xbf16>
    %14 = arith.extf %13 : vector<16x16xbf16> to vector<16x16xf32>
    %c0_8 = arith.constant 0 : index
    %c0_9 = arith.constant 0 : index
    %c64 = arith.constant 64 : index
    %15 = vector.load %arg2[%c0_8, %c0_9, %c64] : memref<1x16x96xbf16, #tpu.memory_space<vmem>>, vector<1x16x16xbf16>
    %16 = vector.shape_cast %15 : vector<1x16x16xbf16> to vector<16x16xbf16>
    %17 = arith.mulf %11, %5 : vector<16x16xf32>
    %18 = vector.extract_strided_slice %11 {offsets = [0, 8], sizes = [16, 8], strides = [1, 1]} : vector<16x16xf32> to vector<16x8xf32>
    %19 = vector.extract_strided_slice %11 {offsets = [0, 0], sizes = [16, 8], strides = [1, 1]} : vector<16x16xf32> to vector<16x8xf32>
    %20 = tpu.concatenate %18, %19 in 1 : vector<16x8xf32>, vector<16x8xf32> -> vector<16x16xf32>
    %21 = arith.mulf %20, %7 : vector<16x16xf32>
    %22 = arith.addf %17, %21 : vector<16x16xf32>
    %cst = arith.constant 2.500000e-01 : f32
    %23 = vector.broadcast %cst : f32 to vector<16x16xf32>
    %24 = arith.mulf %22, %23 : vector<16x16xf32>
    %25 = arith.truncf %24 : vector<16x16xf32> to vector<16x16xbf16>
    %c0_10 = arith.constant 0 : index
    %c0_11 = arith.constant 0 : index
    %26 = vector.load %arg4[%c0_10, %c0_11] : memref<16x32xf32, #tpu.memory_space<vmem>>, vector<16x16xf32>
    %c0_12 = arith.constant 0 : index
    %c0_13 = arith.constant 0 : index
    %27 = vector.load %arg5[%c0_12, %c0_13] : memref<16x32xf32, #tpu.memory_space<vmem>>, vector<16x16xf32>
    %28 = arith.mulf %14, %26 : vector<16x16xf32>
    %29 = vector.extract_strided_slice %14 {offsets = [0, 8], sizes = [16, 8], strides = [1, 1]} : vector<16x16xf32> to vector<16x8xf32>
    %30 = vector.extract_strided_slice %14 {offsets = [0, 0], sizes = [16, 8], strides = [1, 1]} : vector<16x16xf32> to vector<16x8xf32>
    %31 = tpu.concatenate %29, %30 in 1 : vector<16x8xf32>, vector<16x8xf32> -> vector<16x16xf32>
    %32 = arith.mulf %31, %27 : vector<16x16xf32>
    %33 = arith.addf %28, %32 : vector<16x16xf32>
    %34 = arith.truncf %33 : vector<16x16xf32> to vector<16x16xbf16>
    %cst_14 = arith.constant dense<0.000000e+00> : vector<16x16xf32>
    %35 = tpu.matmul %25, %34, %cst_14 {dimension_numbers = #tpu.dot_dimension_numbers<[1], [1], [0], [0], [0, 0, 1, 0], [], []>} : vector<16x16xbf16>, vector<16x16xbf16>, vector<16x16xf32> -> vector<16x16xf32>
    %36 = vector.broadcast %3 : vector<1x16xf32> to vector<16x16xf32>
    %37 = arith.addf %35, %36 : vector<16x16xf32>
    %cst_15 = arith.constant dense<0xFF800000> : vector<16xf32>
    %38 = vector.multi_reduction <maximumf>, %37, %cst_15 [1] : vector<16x16xf32> to vector<16xf32>
    %39 = vector.shape_cast %38 : vector<16xf32> to vector<16x1xf32>
    %40 = vector.broadcast %39 : vector<16x1xf32> to vector<16x16xf32>
    %41 = arith.subf %37, %40 : vector<16x16xf32>
    %42 = math.exp %41 : vector<16x16xf32>
    %cst_16 = arith.constant dense<0.000000e+00> : vector<16xf32>
    %43 = vector.multi_reduction <add>, %42, %cst_16 [1] : vector<16x16xf32> to vector<16xf32>
    %44 = vector.shape_cast %43 : vector<16xf32> to vector<16x1xf32>
    %45 = tpu.reciprocal %44 {approx = true} : vector<16x1xf32> -> vector<16x1xf32>
    %46 = vector.broadcast %45 : vector<16x1xf32> to vector<16x16xf32>
    %47 = arith.mulf %42, %46 : vector<16x16xf32>
    %48 = arith.truncf %47 : vector<16x16xf32> to vector<16x16xbf16>
    %cst_17 = arith.constant dense<0.000000e+00> : vector<16x16xf32>
    %49 = tpu.matmul %48, %16, %cst_17 {dimension_numbers = #tpu.dot_dimension_numbers<[1], [0], [0], [1], [0, 0, 1, 1], [], []>} : vector<16x16xbf16>, vector<16x16xbf16>, vector<16x16xf32> -> vector<16x16xf32>
    %c0_18 = arith.constant 0 : index
    %c0_19 = arith.constant 0 : index
    %50 = vector.load %arg10[%c0_18, %c0_19] : memref<16x32xf32, #tpu.memory_space<vmem>>, vector<16x16xf32>
    tpu.vector_store %arg10[%c0_18, %c0_19], %49 {strides = array<i32>} : memref<16x32xf32, #tpu.memory_space<vmem>>, vector<16x16xf32>,
    %51 = arith.index_cast %1 : i32 to index
    %c16 = arith.constant 16 : index
    %52 = vector.load %arg4[%51, %c16] : memref<16x32xf32, #tpu.memory_space<vmem>>, vector<16x16xf32>
    %53 = arith.index_cast %1 : i32 to index
    %c16_20 = arith.constant 16 : index
    %54 = vector.load %arg5[%53, %c16_20] : memref<16x32xf32, #tpu.memory_space<vmem>>, vector<16x16xf32>
    %c0_21 = arith.constant 0 : index
    %55 = arith.index_cast %1 : i32 to index
    %c16_22 = arith.constant 16 : index
    %56 = vector.load %arg2[%c0_21, %55, %c16_22] : memref<1x16x96xbf16, #tpu.memory_space<vmem>>, vector<1x16x16xbf16>
    %57 = vector.shape_cast %56 : vector<1x16x16xbf16> to vector<16x16xbf16>
    %58 = arith.extf %57 : vector<16x16xbf16> to vector<16x16xf32>
    %c0_23 = arith.constant 0 : index
    %c0_24 = arith.constant 0 : index
    %c48 = arith.constant 48 : index
    %59 = vector.load %arg2[%c0_23, %c0_24, %c48] : memref<1x16x96xbf16, #tpu.memory_space<vmem>>, vector<1x16x16xbf16>
    %60 = vector.shape_cast %59 : vector<1x16x16xbf16> to vector<16x16xbf16>
    %61 = arith.extf %60 : vector<16x16xbf16> to vector<16x16xf32>
    %c0_25 = arith.constant 0 : index
    %c0_26 = arith.constant 0 : index
    %c80 = arith.constant 80 : index
    %62 = vector.load %arg2[%c0_25, %c0_26, %c80] : memref<1x16x96xbf16, #tpu.memory_space<vmem>>, vector<1x16x16xbf16>
    %63 = vector.shape_cast %62 : vector<1x16x16xbf16> to vector<16x16xbf16>
    %64 = arith.mulf %58, %52 : vector<16x16xf32>
    %65 = vector.extract_strided_slice %58 {offsets = [0, 8], sizes = [16, 8], strides = [1, 1]} : vector<16x16xf32> to vector<16x8xf32>
    %66 = vector.extract_strided_slice %58 {offsets = [0, 0], sizes = [16, 8], strides = [1, 1]} : vector<16x16xf32> to vector<16x8xf32>
    %67 = tpu.concatenate %65, %66 in 1 : vector<16x8xf32>, vector<16x8xf32> -> vector<16x16xf32>
    %68 = arith.mulf %67, %54 : vector<16x16xf32>
    %69 = arith.addf %64, %68 : vector<16x16xf32>
    %cst_27 = arith.constant 2.500000e-01 : f32
    %70 = vector.broadcast %cst_27 : f32 to vector<16x16xf32>
    %71 = arith.mulf %69, %70 : vector<16x16xf32>
    %72 = arith.truncf %71 : vector<16x16xf32> to vector<16x16xbf16>
    %c0_28 = arith.constant 0 : index
    %c16_29 = arith.constant 16 : index
    %73 = vector.load %arg4[%c0_28, %c16_29] : memref<16x32xf32, #tpu.memory_space<vmem>>, vector<16x16xf32>
    %c0_30 = arith.constant 0 : index
    %c16_31 = arith.constant 16 : index
    %74 = vector.load %arg5[%c0_30, %c16_31] : memref<16x32xf32, #tpu.memory_space<vmem>>, vector<16x16xf32>
    %75 = arith.mulf %61, %73 : vector<16x16xf32>
    %76 = vector.extract_strided_slice %61 {offsets = [0, 8], sizes = [16, 8], strides = [1, 1]} : vector<16x16xf32> to vector<16x8xf32>
    %77 = vector.extract_strided_slice %61 {offsets = [0, 0], sizes = [16, 8], strides = [1, 1]} : vector<16x16xf32> to vector<16x8xf32>
    %78 = tpu.concatenate %76, %77 in 1 : vector<16x8xf32>, vector<16x8xf32> -> vector<16x16xf32>
    %79 = arith.mulf %78, %74 : vector<16x16xf32>
    %80 = arith.addf %75, %79 : vector<16x16xf32>
    %81 = arith.truncf %80 : vector<16x16xf32> to vector<16x16xbf16>
    %cst_32 = arith.constant dense<0.000000e+00> : vector<16x16xf32>
    %82 = tpu.matmul %72, %81, %cst_32 {dimension_numbers = #tpu.dot_dimension_numbers<[1], [1], [0], [0], [0, 0, 1, 0], [], []>} : vector<16x16xbf16>, vector<16x16xbf16>, vector<16x16xf32> -> vector<16x16xf32>
    %83 = vector.broadcast %3 : vector<1x16xf32> to vector<16x16xf32>
    %84 = arith.addf %82, %83 : vector<16x16xf32>
    %cst_33 = arith.constant dense<0xFF800000> : vector<16xf32>
    %85 = vector.multi_reduction <maximumf>, %84, %cst_33 [1] : vector<16x16xf32> to vector<16xf32>
    %86 = vector.shape_cast %85 : vector<16xf32> to vector<16x1xf32>
    %87 = vector.broadcast %86 : vector<16x1xf32> to vector<16x16xf32>
    %88 = arith.subf %84, %87 : vector<16x16xf32>
    %89 = math.exp %88 : vector<16x16xf32>
    %cst_34 = arith.constant dense<0.000000e+00> : vector<16xf32>
    %90 = vector.multi_reduction <add>, %89, %cst_34 [1] : vector<16x16xf32> to vector<16xf32>
    %91 = vector.shape_cast %90 : vector<16xf32> to vector<16x1xf32>
    %92 = tpu.reciprocal %91 {approx = true} : vector<16x1xf32> -> vector<16x1xf32>
    %93 = vector.broadcast %92 : vector<16x1xf32> to vector<16x16xf32>
    %94 = arith.mulf %89, %93 : vector<16x16xf32>
    %95 = arith.truncf %94 : vector<16x16xf32> to vector<16x16xbf16>
    %cst_35 = arith.constant dense<0.000000e+00> : vector<16x16xf32>
    %96 = tpu.matmul %95, %63, %cst_35 {dimension_numbers = #tpu.dot_dimension_numbers<[1], [0], [0], [1], [0, 0, 1, 1], [], []>} : vector<16x16xbf16>, vector<16x16xbf16>, vector<16x16xf32> -> vector<16x16xf32>
    %c0_36 = arith.constant 0 : index
    %c16_37 = arith.constant 16 : index
    %97 = vector.load %arg10[%c0_36, %c16_37] : memref<16x32xf32, #tpu.memory_space<vmem>>, vector<16x16xf32>
    tpu.vector_store %arg10[%c0_36, %c16_37], %96 {strides = array<i32>} : memref<16x32xf32, #tpu.memory_space<vmem>>, vector<16x16xf32>,
    %c0_38 = arith.constant 0 : index
    %c0_39 = arith.constant 0 : index
    %98 = vector.load %arg10[%c0_38, %c0_39] : memref<16x32xf32, #tpu.memory_space<vmem>>, vector<16x32xf32>
    %99 = arith.truncf %98 : vector<16x32xf32> to vector<16x32xbf16>
    %c0_40 = arith.constant 0 : index
    %c0_41 = arith.constant 0 : index
    %100 = vector.load %arg7[%c0_40, %c0_41] : memref<32x32xbf16, #tpu.memory_space<vmem>>, vector<32x32xbf16>
    %cst_42 = arith.constant dense<0.000000e+00> : vector<16x32xf32>
    %101 = tpu.matmul %99, %100, %cst_42 {dimension_numbers = #tpu.dot_dimension_numbers<[1], [0], [0], [1], [0, 0, 1, 1], [], []>} : vector<16x32xbf16>, vector<32x32xbf16>, vector<16x32xf32> -> vector<16x32xf32>
    %c0_43 = arith.constant 0 : index
    %c0_44 = arith.constant 0 : index
    %102 = vector.load %arg8[%c0_43, %c0_44] : memref<1x32xf32, #tpu.memory_space<vmem>>, vector<1x32xf32>
    %103 = vector.broadcast %102 : vector<1x32xf32> to vector<16x32xf32>
    %104 = arith.addf %101, %103 : vector<16x32xf32>
    %c0_45 = arith.constant 0 : index
    %c0_46 = arith.constant 0 : index
    %c0_47 = arith.constant 0 : index
    %105 = vector.load %arg3[%c0_45, %c0_46, %c0_47] : memref<1x16x32xf32, #tpu.memory_space<vmem>>, vector<1x16x32xf32>
    %106 = vector.shape_cast %105 : vector<1x16x32xf32> to vector<16x32xf32>
    %107 = arith.addf %106, %104 : vector<16x32xf32>
    %c0_48 = arith.constant 0 : index
    %c0_49 = arith.constant 0 : index
    %c0_50 = arith.constant 0 : index
    %108 = vector.load %arg9[%c0_48, %c0_49, %c0_50] : memref<1x16x32xf32, #tpu.memory_space<vmem>>, vector<1x16x32xf32>
    %109 = vector.shape_cast %108 : vector<1x16x32xf32> to vector<16x32xf32>
    %110 = vector.shape_cast %107 : vector<16x32xf32> to vector<1x16x32xf32>
    tpu.vector_store %arg9[%c0_48, %c0_49, %c0_50], %110 {strides = array<i32>} : memref<1x16x32xf32, #tpu.memory_space<vmem>>, vector<1x16x32xf32>,
    return
  }
  func.func @transform_0(%arg0: i32, %arg1: i32) -> (i32, i32, i32) {
    %c0_i32 = arith.constant 0 : i32
    %c0_i32_0 = arith.constant 0 : i32
    %c0_i32_1 = arith.constant 0 : i32
    return %arg0, %c0_i32, %c0_i32_0 : i32, i32, i32
  }
  func.func @transform_1(%arg0: i32, %arg1: i32) -> (i32, i32, i32) {
    %c0_i32 = arith.constant 0 : i32
    %c0_i32_0 = arith.constant 0 : i32
    return %arg0, %arg1, %c0_i32 : i32, i32, i32
  }
  func.func @transform_2(%arg0: i32, %arg1: i32) -> (i32, i32) {
    %c0_i32 = arith.constant 0 : i32
    %c0_i32_0 = arith.constant 0 : i32
    %c0_i32_1 = arith.constant 0 : i32
    return %c0_i32, %c0_i32_0 : i32, i32
  }
  func.func @transform_3(%arg0: i32, %arg1: i32) -> (i32, i32) {
    %c0_i32 = arith.constant 0 : i32
    %c0_i32_0 = arith.constant 0 : i32
    %c0_i32_1 = arith.constant 0 : i32
    return %c0_i32, %c0_i32_0 : i32, i32
  }
  func.func @transform_4(%arg0: i32, %arg1: i32) -> (i32, i32, i32) {
    %c0_i32 = arith.constant 0 : i32
    %c0_i32_0 = arith.constant 0 : i32
    %c0_i32_1 = arith.constant 0 : i32
    return %arg0, %c0_i32, %c0_i32_0 : i32, i32, i32
  }
  func.func @transform_5(%arg0: i32, %arg1: i32) -> (i32, i32) {
    %c0_i32 = arith.constant 0 : i32
    %c0_i32_0 = arith.constant 0 : i32
    %c0_i32_1 = arith.constant 0 : i32
    return %c0_i32, %c0_i32_0 : i32, i32
  }
  func.func @transform_6(%arg0: i32, %arg1: i32) -> (i32, i32) {
    %c0_i32 = arith.constant 0 : i32
    %c0_i32_0 = arith.constant 0 : i32
    %c0_i32_1 = arith.constant 0 : i32
    return %c0_i32, %c0_i32_0 : i32, i32
  }
  func.func @transform_7(%arg0: i32, %arg1: i32) -> (i32, i32, i32) {
    %c0_i32 = arith.constant 0 : i32
    %c0_i32_0 = arith.constant 0 : i32
    return %arg0, %arg1, %c0_i32 : i32, i32, i32
  }
}

module attributes {stable_mosaic.version = 11 : i64} {
  func.func @_layernorm_kernel(%arg0: i32, %arg1: memref<32x32xf32, #tpu.memory_space<vmem>>, %arg2: memref<1x32xf32, #tpu.memory_space<vmem>>, %arg3: memref<1x32xf32, #tpu.memory_space<vmem>>, %arg4: memref<32x32xf32, #tpu.memory_space<vmem>>) attributes {dimension_semantics = [#tpu.dimension_semantics<parallel>], iteration_bounds = array<i64: 1>, scalar_prefetch = 0 : i64, scratch_operands = 0 : i64, tpu.core_type = #tpu.core_type<tc>, window_params = [{transform_indices = @transform_0, window_bounds = array<i64: 32, 32>}, {pipeline_mode = #tpu.pipeline_mode<synchronous>, transform_indices = @transform_1, window_bounds = array<i64: 1, 32>}, {pipeline_mode = #tpu.pipeline_mode<synchronous>, transform_indices = @transform_2, window_bounds = array<i64: 1, 32>}, {transform_indices = @transform_3, window_bounds = array<i64: 32, 32>}]} {
    %c0 = arith.constant 0 : index
    %c0_0 = arith.constant 0 : index
    %0 = vector.load %arg1[%c0, %c0_0] : memref<32x32xf32, #tpu.memory_space<vmem>>, vector<32x32xf32>
    %cst = arith.constant dense<0.000000e+00> : vector<32xf32>
    %1 = vector.multi_reduction <add>, %0, %cst [1] : vector<32x32xf32> to vector<32xf32>
    %2 = vector.shape_cast %1 : vector<32xf32> to vector<32x1xf32>
    %cst_1 = arith.constant 3.200000e+01 : f32
    %3 = vector.broadcast %cst_1 : f32 to vector<32x1xf32>
    %4 = arith.divf %2, %3 : vector<32x1xf32>
    %5 = vector.broadcast %4 : vector<32x1xf32> to vector<32x32xf32>
    %6 = arith.subf %0, %5 : vector<32x32xf32>
    %7 = arith.mulf %6, %6 : vector<32x32xf32>
    %cst_2 = arith.constant dense<0.000000e+00> : vector<32xf32>
    %8 = vector.multi_reduction <add>, %7, %cst_2 [1] : vector<32x32xf32> to vector<32xf32>
    %9 = vector.shape_cast %8 : vector<32xf32> to vector<32x1xf32>
    %cst_3 = arith.constant 3.200000e+01 : f32
    %10 = vector.broadcast %cst_3 : f32 to vector<32x1xf32>
    %11 = arith.divf %9, %10 : vector<32x1xf32>
    %12 = vector.broadcast %4 : vector<32x1xf32> to vector<32x32xf32>
    %13 = arith.subf %0, %12 : vector<32x32xf32>
    %cst_4 = arith.constant 9.99999974E-6 : f32
    %14 = vector.broadcast %cst_4 : f32 to vector<32x1xf32>
    %15 = arith.addf %11, %14 : vector<32x1xf32>
    %16 = math.rsqrt %15 : vector<32x1xf32>
    %17 = vector.broadcast %16 : vector<32x1xf32> to vector<32x32xf32>
    %18 = arith.mulf %13, %17 : vector<32x32xf32>
    %c0_5 = arith.constant 0 : index
    %c0_6 = arith.constant 0 : index
    %19 = vector.load %arg2[%c0_5, %c0_6] : memref<1x32xf32, #tpu.memory_space<vmem>>, vector<1x32xf32>
    %20 = vector.broadcast %19 : vector<1x32xf32> to vector<32x32xf32>
    %21 = arith.mulf %18, %20 : vector<32x32xf32>
    %c0_7 = arith.constant 0 : index
    %c0_8 = arith.constant 0 : index
    %22 = vector.load %arg3[%c0_7, %c0_8] : memref<1x32xf32, #tpu.memory_space<vmem>>, vector<1x32xf32>
    %23 = vector.broadcast %22 : vector<1x32xf32> to vector<32x32xf32>
    %24 = arith.addf %21, %23 : vector<32x32xf32>
    %c0_9 = arith.constant 0 : index
    %c0_10 = arith.constant 0 : index
    %25 = vector.load %arg4[%c0_9, %c0_10] : memref<32x32xf32, #tpu.memory_space<vmem>>, vector<32x32xf32>
    tpu.vector_store %arg4[%c0_9, %c0_10], %24 {strides = array<i32>} : memref<32x32xf32, #tpu.memory_space<vmem>>, vector<32x32xf32>,
    return
  }
  func.func @transform_0(%arg0: i32) -> (i32, i32) {
    %c0_i32 = arith.constant 0 : i32
    %c0_i32_0 = arith.constant 0 : i32
    return %arg0, %c0_i32 : i32, i32
  }
  func.func @transform_1(%arg0: i32) -> (i32, i32) {
    %c0_i32 = arith.constant 0 : i32
    %c0_i32_0 = arith.constant 0 : i32
    %c0_i32_1 = arith.constant 0 : i32
    return %c0_i32, %c0_i32_0 : i32, i32
  }
  func.func @transform_2(%arg0: i32) -> (i32, i32) {
    %c0_i32 = arith.constant 0 : i32
    %c0_i32_0 = arith.constant 0 : i32
    %c0_i32_1 = arith.constant 0 : i32
    return %c0_i32, %c0_i32_0 : i32, i32
  }
  func.func @transform_3(%arg0: i32) -> (i32, i32) {
    %c0_i32 = arith.constant 0 : i32
    %c0_i32_0 = arith.constant 0 : i32
    return %arg0, %c0_i32 : i32, i32
  }
}

module attributes {stable_mosaic.version = 11 : i64} {
  func.func @_ffn_kernel(%arg0: i32, %arg1: i32, %arg2: memref<32x32xf32, #tpu.memory_space<vmem>>, %arg3: memref<1x32xf32, #tpu.memory_space<vmem>>, %arg4: memref<1x32xf32, #tpu.memory_space<vmem>>, %arg5: memref<32x64xbf16, #tpu.memory_space<vmem>>, %arg6: memref<1x64xf32, #tpu.memory_space<vmem>>, %arg7: memref<64x32xbf16, #tpu.memory_space<vmem>>, %arg8: memref<1x32xf32, #tpu.memory_space<vmem>>, %arg9: memref<32x32xf32, #tpu.memory_space<vmem>>, %arg10: memref<32x32xbf16, #tpu.memory_space<vmem>>, %arg11: memref<32x32xf32, #tpu.memory_space<vmem>>) attributes {dimension_semantics = [#tpu.dimension_semantics<parallel>, #tpu.dimension_semantics<arbitrary>], iteration_bounds = array<i64: 1, 1>, scalar_prefetch = 0 : i64, scratch_operands = 2 : i64, tpu.core_type = #tpu.core_type<tc>, window_params = [{transform_indices = @transform_0, window_bounds = array<i64: 32, 32>}, {pipeline_mode = #tpu.pipeline_mode<synchronous>, transform_indices = @transform_1, window_bounds = array<i64: 1, 32>}, {pipeline_mode = #tpu.pipeline_mode<synchronous>, transform_indices = @transform_2, window_bounds = array<i64: 1, 32>}, {transform_indices = @transform_3, window_bounds = array<i64: 32, 64>}, {transform_indices = @transform_4, window_bounds = array<i64: 1, 64>}, {transform_indices = @transform_5, window_bounds = array<i64: 64, 32>}, {pipeline_mode = #tpu.pipeline_mode<synchronous>, transform_indices = @transform_6, window_bounds = array<i64: 1, 32>}, {transform_indices = @transform_7, window_bounds = array<i64: 32, 32>}]} {
    %c0_i32 = arith.constant 0 : i32
    %0 = arith.cmpi eq, %arg1, %c0_i32 : i32
    %1 = arith.extui %0 : i1 to i32
    %c0_i32_0 = arith.constant 0 : i32
    %2 = arith.cmpi ne, %1, %c0_i32_0 : i32
    scf.if %2 {
      %c0_19 = arith.constant 0 : index
      %c0_20 = arith.constant 0 : index
      %31 = vector.load %arg2[%c0_19, %c0_20] : memref<32x32xf32, #tpu.memory_space<vmem>>, vector<32x32xf32>
      %cst_21 = arith.constant dense<0.000000e+00> : vector<32xf32>
      %32 = vector.multi_reduction <add>, %31, %cst_21 [1] : vector<32x32xf32> to vector<32xf32>
      %33 = vector.shape_cast %32 : vector<32xf32> to vector<32x1xf32>
      %cst_22 = arith.constant 3.200000e+01 : f32
      %34 = vector.broadcast %cst_22 : f32 to vector<32x1xf32>
      %35 = arith.divf %33, %34 : vector<32x1xf32>
      %36 = vector.broadcast %35 : vector<32x1xf32> to vector<32x32xf32>
      %37 = arith.subf %31, %36 : vector<32x32xf32>
      %38 = arith.mulf %37, %37 : vector<32x32xf32>
      %cst_23 = arith.constant dense<0.000000e+00> : vector<32xf32>
      %39 = vector.multi_reduction <add>, %38, %cst_23 [1] : vector<32x32xf32> to vector<32xf32>
      %40 = vector.shape_cast %39 : vector<32xf32> to vector<32x1xf32>
      %cst_24 = arith.constant 3.200000e+01 : f32
      %41 = vector.broadcast %cst_24 : f32 to vector<32x1xf32>
      %42 = arith.divf %40, %41 : vector<32x1xf32>
      %43 = vector.broadcast %35 : vector<32x1xf32> to vector<32x32xf32>
      %44 = arith.subf %31, %43 : vector<32x32xf32>
      %cst_25 = arith.constant 9.99999974E-6 : f32
      %45 = vector.broadcast %cst_25 : f32 to vector<32x1xf32>
      %46 = arith.addf %42, %45 : vector<32x1xf32>
      %47 = math.rsqrt %46 : vector<32x1xf32>
      %48 = vector.broadcast %47 : vector<32x1xf32> to vector<32x32xf32>
      %49 = arith.mulf %44, %48 : vector<32x32xf32>
      %c0_26 = arith.constant 0 : index
      %c0_27 = arith.constant 0 : index
      %50 = vector.load %arg3[%c0_26, %c0_27] : memref<1x32xf32, #tpu.memory_space<vmem>>, vector<1x32xf32>
      %51 = vector.broadcast %50 : vector<1x32xf32> to vector<32x32xf32>
      %52 = arith.mulf %49, %51 : vector<32x32xf32>
      %c0_28 = arith.constant 0 : index
      %c0_29 = arith.constant 0 : index
      %53 = vector.load %arg4[%c0_28, %c0_29] : memref<1x32xf32, #tpu.memory_space<vmem>>, vector<1x32xf32>
      %54 = vector.broadcast %53 : vector<1x32xf32> to vector<32x32xf32>
      %55 = arith.addf %52, %54 : vector<32x32xf32>
      %56 = arith.truncf %55 : vector<32x32xf32> to vector<32x32xbf16>
      %c0_30 = arith.constant 0 : index
      %c0_31 = arith.constant 0 : index
      %57 = vector.load %arg10[%c0_30, %c0_31] : memref<32x32xbf16, #tpu.memory_space<vmem>>, vector<32x32xbf16>
      tpu.vector_store %arg10[%c0_30, %c0_31], %56 {strides = array<i32>} : memref<32x32xbf16, #tpu.memory_space<vmem>>, vector<32x32xbf16>,
      %cst_32 = arith.constant 0.000000e+00 : f32
      %58 = vector.broadcast %cst_32 : f32 to vector<32x32xf32>
      %c0_33 = arith.constant 0 : index
      %c0_34 = arith.constant 0 : index
      %59 = vector.load %arg11[%c0_33, %c0_34] : memref<32x32xf32, #tpu.memory_space<vmem>>, vector<32x32xf32>
      tpu.vector_store %arg11[%c0_33, %c0_34], %58 {strides = array<i32>} : memref<32x32xf32, #tpu.memory_space<vmem>>, vector<32x32xf32>,
    } else {
    }
    %c0 = arith.constant 0 : index
    %c0_1 = arith.constant 0 : index
    %3 = vector.load %arg10[%c0, %c0_1] : memref<32x32xbf16, #tpu.memory_space<vmem>>, vector<32x32xbf16>
    %c0_2 = arith.constant 0 : index
    %c0_3 = arith.constant 0 : index
    %4 = vector.load %arg5[%c0_2, %c0_3] : memref<32x64xbf16, #tpu.memory_space<vmem>>, vector<32x64xbf16>
    %cst = arith.constant dense<0.000000e+00> : vector<32x64xf32>
    %5 = tpu.matmul %3, %4, %cst {dimension_numbers = #tpu.dot_dimension_numbers<[1], [0], [0], [1], [0, 0, 1, 1], [], []>} : vector<32x32xbf16>, vector<32x64xbf16>, vector<32x64xf32> -> vector<32x64xf32>
    %c0_4 = arith.constant 0 : index
    %c0_5 = arith.constant 0 : index
    %6 = vector.load %arg6[%c0_4, %c0_5] : memref<1x64xf32, #tpu.memory_space<vmem>>, vector<1x64xf32>
    %7 = vector.broadcast %6 : vector<1x64xf32> to vector<32x64xf32>
    %8 = arith.addf %5, %7 : vector<32x64xf32>
    %cst_6 = arith.constant 5.000000e-01 : f32
    %9 = vector.broadcast %cst_6 : f32 to vector<32x64xf32>
    %10 = arith.mulf %9, %8 : vector<32x64xf32>
    %cst_7 = arith.constant 4.471500e-02 : f32
    %11 = vector.broadcast %cst_7 : f32 to vector<32x64xf32>
    %12 = arith.mulf %11, %8 : vector<32x64xf32>
    %13 = arith.mulf %12, %8 : vector<32x64xf32>
    %14 = arith.mulf %13, %8 : vector<32x64xf32>
    %15 = arith.addf %8, %14 : vector<32x64xf32>
    %cst_8 = arith.constant 0.797884583 : f32
    %16 = vector.broadcast %cst_8 : f32 to vector<32x64xf32>
    %17 = arith.mulf %16, %15 : vector<32x64xf32>
    %18 = math.tanh %17 : vector<32x64xf32>
    %cst_9 = arith.constant 1.000000e+00 : f32
    %19 = vector.broadcast %cst_9 : f32 to vector<32x64xf32>
    %20 = arith.addf %19, %18 : vector<32x64xf32>
    %21 = arith.mulf %10, %20 : vector<32x64xf32>
    %c0_10 = arith.constant 0 : index
    %c0_11 = arith.constant 0 : index
    %22 = vector.load %arg11[%c0_10, %c0_11] : memref<32x32xf32, #tpu.memory_space<vmem>>, vector<32x32xf32>
    %23 = arith.truncf %21 : vector<32x64xf32> to vector<32x64xbf16>
    %c0_12 = arith.constant 0 : index
    %c0_13 = arith.constant 0 : index
    %24 = vector.load %arg7[%c0_12, %c0_13] : memref<64x32xbf16, #tpu.memory_space<vmem>>, vector<64x32xbf16>
    %cst_14 = arith.constant dense<0.000000e+00> : vector<32x32xf32>
    %25 = tpu.matmul %23, %24, %cst_14 {dimension_numbers = #tpu.dot_dimension_numbers<[1], [0], [0], [1], [0, 0, 1, 1], [], []>} : vector<32x64xbf16>, vector<64x32xbf16>, vector<32x32xf32> -> vector<32x32xf32>
    %26 = arith.addf %22, %25 : vector<32x32xf32>
    %c0_15 = arith.constant 0 : index
    %c0_16 = arith.constant 0 : index
    %27 = vector.load %arg11[%c0_15, %c0_16] : memref<32x32xf32, #tpu.memory_space<vmem>>, vector<32x32xf32>
    tpu.vector_store %arg11[%c0_15, %c0_16], %26 {strides = array<i32>} : memref<32x32xf32, #tpu.memory_space<vmem>>, vector<32x32xf32>,
    %c0_i32_17 = arith.constant 0 : i32
    %28 = arith.cmpi eq, %arg1, %c0_i32_17 : i32
    %29 = arith.extui %28 : i1 to i32
    %c0_i32_18 = arith.constant 0 : i32
    %30 = arith.cmpi ne, %29, %c0_i32_18 : i32
    scf.if %30 {
      %c0_19 = arith.constant 0 : index
      %c0_20 = arith.constant 0 : index
      %31 = vector.load %arg2[%c0_19, %c0_20] : memref<32x32xf32, #tpu.memory_space<vmem>>, vector<32x32xf32>
      %c0_21 = arith.constant 0 : index
      %c0_22 = arith.constant 0 : index
      %32 = vector.load %arg11[%c0_21, %c0_22] : memref<32x32xf32, #tpu.memory_space<vmem>>, vector<32x32xf32>
      %33 = arith.addf %31, %32 : vector<32x32xf32>
      %c0_23 = arith.constant 0 : index
      %c0_24 = arith.constant 0 : index
      %34 = vector.load %arg8[%c0_23, %c0_24] : memref<1x32xf32, #tpu.memory_space<vmem>>, vector<1x32xf32>
      %35 = vector.broadcast %34 : vector<1x32xf32> to vector<32x32xf32>
      %36 = arith.addf %33, %35 : vector<32x32xf32>
      %c0_25 = arith.constant 0 : index
      %c0_26 = arith.constant 0 : index
      %37 = vector.load %arg9[%c0_25, %c0_26] : memref<32x32xf32, #tpu.memory_space<vmem>>, vector<32x32xf32>
      tpu.vector_store %arg9[%c0_25, %c0_26], %36 {strides = array<i32>} : memref<32x32xf32, #tpu.memory_space<vmem>>, vector<32x32xf32>,
    } else {
    }
    return
  }
  func.func @transform_0(%arg0: i32, %arg1: i32) -> (i32, i32) {
    %c0_i32 = arith.constant 0 : i32
    %c0_i32_0 = arith.constant 0 : i32
    return %arg0, %c0_i32 : i32, i32
  }
  func.func @transform_1(%arg0: i32, %arg1: i32) -> (i32, i32) {
    %c0_i32 = arith.constant 0 : i32
    %c0_i32_0 = arith.constant 0 : i32
    %c0_i32_1 = arith.constant 0 : i32
    return %c0_i32, %c0_i32_0 : i32, i32
  }
  func.func @transform_2(%arg0: i32, %arg1: i32) -> (i32, i32) {
    %c0_i32 = arith.constant 0 : i32
    %c0_i32_0 = arith.constant 0 : i32
    %c0_i32_1 = arith.constant 0 : i32
    return %c0_i32, %c0_i32_0 : i32, i32
  }
  func.func @transform_3(%arg0: i32, %arg1: i32) -> (i32, i32) {
    %c0_i32 = arith.constant 0 : i32
    %c0_i32_0 = arith.constant 0 : i32
    return %c0_i32, %arg1 : i32, i32
  }
  func.func @transform_4(%arg0: i32, %arg1: i32) -> (i32, i32) {
    %c0_i32 = arith.constant 0 : i32
    %c0_i32_0 = arith.constant 0 : i32
    return %c0_i32, %arg1 : i32, i32
  }
  func.func @transform_5(%arg0: i32, %arg1: i32) -> (i32, i32) {
    %c0_i32 = arith.constant 0 : i32
    %c0_i32_0 = arith.constant 0 : i32
    return %arg1, %c0_i32 : i32, i32
  }
  func.func @transform_6(%arg0: i32, %arg1: i32) -> (i32, i32) {
    %c0_i32 = arith.constant 0 : i32
    %c0_i32_0 = arith.constant 0 : i32
    %c0_i32_1 = arith.constant 0 : i32
    return %c0_i32, %c0_i32_0 : i32, i32
  }
  func.func @transform_7(%arg0: i32, %arg1: i32) -> (i32, i32) {
    %c0_i32 = arith.constant 0 : i32
    %c0_i32_0 = arith.constant 0 : i32
    return %arg0, %c0_i32 : i32, i32
  }
}

</mosaic_0001>

<bundles_post_ra>
// kernel: tile.20
= control target key start
LH: loop header
LB: loop body
LE: loop exit
PB: predicated region body
PF: predicated region fallthrough
CT: control target
= control target key end

     0   :  { %vm82_vm0 = vcmask 1047556   ;;  %vm84_vm1 = vcmask 130048   ;;  %vm103_vm2 = vcmask 261248   ;;  %s225_s0 = inlined_call_operand.vmem [shape: f32[16,2,16], index: 0, kind: input, shape index: {}]   ;;  %s226_s1 = inlined_call_operand.vmem [shape: f32[16,32], index: 1, kind: output, shape index: {}]  }
   0x1   :  { %v138_v0 = vld [vmem:[%s225_s0 + $0xe] sm:$0x3]  ;;  %v139_v1 = vld [vmem:[%s225_s0 + $0xc] sm:$0x3]  ;;  %v140_v2 = vld [vmem:[%s225_s0 + $0xa] sm:$0x3] }
   0x2   :  { %48 = vst [vmem:[#allocation0 + $0x38] sm:$0x3] %v138_v0  ;;  %53 = vst [vmem:[#allocation0 + $0x30] sm:$0x3] %v139_v1  ;;  %v141_v3 = vld [vmem:[%s225_s0 + $0x8] sm:$0x3] }
   0x3   :  { %58 = vst [vmem:[#allocation0 + $0x28] sm:$0x3] %v140_v2  ;;  %v142_v4 = vld [vmem:[%s225_s0 + $0x6] sm:$0x3]  ;;  %v143_v5 = vld [vmem:[%s225_s0 + $0x4] sm:$0x3] }
   0x4   :  { %63 = vst [vmem:[#allocation0 + $0x20] sm:$0x3] %v141_v3  ;;  %68 = vst [vmem:[#allocation0 + $0x18] sm:$0x3] %v142_v4  ;;  %v144_v6 = vld [vmem:[%s225_s0 + $0x2] sm:$0x3] }
   0x5   :  { %73 = vst [vmem:[#allocation0 + $0x10] sm:$0x3] %v143_v5  ;;  %v78_v7 = vld [vmem:[%s225_s0] sm:$0x3]  ;;  %77 = vst [vmem:[#allocation0 + $0x8] sm:$0x3] %v144_v6 }
   0x6   :  { %79 = vst [vmem:[#allocation0] sm:$0x3] %v78_v7  ;;  %v130_v8 = vld [vmem:[%s225_s0 + $0x1e] sm:$0x3]  ;;  %v131_v9 = vld [vmem:[%s225_s0 + $0x1c] sm:$0x3] }
   0x7   :  { %v132_v10 = vld [vmem:[%s225_s0 + $0x1a] sm:$0x3]  ;;  %8 = vst [vmem:[#allocation0 + $0x78] sm:$0x3] %v130_v8  ;;  %13 = vst [vmem:[#allocation0 + $0x70] sm:$0x3] %v131_v9 }
   0x8   :  { %18 = vst [vmem:[#allocation0 + $0x68] sm:$0x3] %v132_v10  ;;  %v133_v11 = vld [vmem:[%s225_s0 + $0x18] sm:$0x3]  ;;  %v134_v12 = vld [vmem:[%s225_s0 + $0x16] sm:$0x3] }
   0x9   :  { %v135_v13 = vld [vmem:[%s225_s0 + $0x14] sm:$0x3]  ;;  %23 = vst [vmem:[#allocation0 + $0x60] sm:$0x3] %v133_v11  ;;  %28 = vst [vmem:[#allocation0 + $0x58] sm:$0x3] %v134_v12 }
   0xa   :  { %33 = vst [vmem:[#allocation0 + $0x50] sm:$0x3] %v135_v13  ;;  %v136_v14 = vld [vmem:[%s225_s0 + $0x12] sm:$0x3]  ;;  %v137_v15 = vld [vmem:[%s225_s0 + $0x10] sm:$0x3] }
   0xb   :  { %38 = vst [vmem:[#allocation0 + $0x48] sm:$0x3] %v136_v14  ;;  %43 = vst [vmem:[#allocation0 + $0x40] sm:$0x3] %v137_v15  ;;  %s148_s0 = smov 16  }
   0xc   :  { %v98_v16 = vld [vmem:[#allocation0 + $0x1] ss:$8 sm:$0xf0]   ;;  %v81_v17 = vld [vmem:[#allocation0] ss:$8 sm:$0xf0]  }
   0xd   :  { %v96_v18 = vld [vmem:[#allocation0 + $0x1] ss:$8 sm:$0xf]   ;;  %v80_v19 = vld [vmem:[#allocation0] ss:$8 sm:$0xf]  }
   0xe   :  { %v100_v20 = vsel %vm82_vm0, %v98_v16, %v96_v18  ;;  %v83_v21 = vsel %vm82_vm0, %v81_v17, %v80_v19 }
   0xf   :  { %101 = vrot.lane.b32.xlu0 %v100_v20, %s148_s0  ;;  %85 = vst.msk [vmem:[%s226_s1] sm:$0xff] %vm84_vm1, %v83_v21  }
  0x10   :  { %v108_v22 = vld [vmem:[#allocation0 + $0x41] ss:$8 sm:$0xf0]   ;;  %v89_v23 = vld [vmem:[#allocation0 + $0x40] ss:$8 sm:$0xf0]  }
  0x12   :  { %v106_v24 = vld [vmem:[#allocation0 + $0x41] ss:$8 sm:$0xf]   ;;  %v87_v25 = vld [vmem:[#allocation0 + $0x40] ss:$8 sm:$0xf]  }
  0x13   :  { %v110_v26 = vsel %vm82_vm0, %v108_v22, %v106_v24  ;;  %v91_v27 = vsel %vm82_vm0, %v89_v23, %v87_v25 }
  0x14   :  { %145 = vst.msk [vmem:[%s226_s1 + $0x8] sm:$0xff] %vm84_vm1, %v91_v27   ;;  %111 = vrot.lane.b32.xlu0 %v110_v26, %s148_s0 }
  0x81   :  { %v102_v28 = vpop.permute.xlu0 %101  }
  0x82   :  { %104 = vst.msk [vmem:[%s226_s1] sm:$0xff] %vm103_vm2, %v102_v28  }
  0x86   :  { %v112_v29 = vpop.permute.xlu0 %111  }
  0x87   :  { %146 = vst.msk [vmem:[%s226_s1 + $0x8] sm:$0xff] %vm103_vm2, %v112_v29  }

// kernel: encoder_forward.1
= control target key start
LH: loop header
LB: loop body
LE: loop exit
PB: predicated region body
PF: predicated region fallthrough
CT: control target
= control target key end

     0   :  { %vm19_vm0 = vcmask 261120   ;;  %s217_s0 = inlined_call_operand.vmem [shape: f32[32,32], index: 0, kind: input, shape index: {}]   ;;  %s218_s1 = inlined_call_operand.vmem [shape: f32[1,32], index: 1, kind: input, shape index: {}]   ;;  %s219_s2 = inlined_call_operand.vmem [shape: f32[1,32], index: 2, kind: input, shape index: {}]   ;;  %s220_s3 = inlined_call_operand.hbm [shape: f32[32,32], index: 3, kind: output, shape index: {}]  }
   0x1   :  { %v15_v0 = vld [vmem:[%s217_s0] sm:$0xff]  ;;  %v17_v1 = vld [vmem:[%s217_s0 + $0x10] sm:$0xff]  ;;  %v16_v2 = vld [vmem:[%s217_s0 + $0x8] sm:$0xff] }
   0x2   :  { %v20_v3 = vsel %vm19_vm0, %v15_v0, 0.0  ;;  %v26_v4 = vsel %vm19_vm0, %v17_v1, 0.0  ;;  %v18_v5 = vld [vmem:[%s217_s0 + $0x18] sm:$0xff] }
   0x3   :  { %8 = vsyncpa [#allocation3], 0  ;;  %21 = vadd.xlane.f32.xlu0 %v20_v3  ;;  %27 = vadd.xlane.f32.xlu1 %v26_v4  ;;  %v23_v6 = vsel %vm19_vm0, %v16_v2, 0.0  ;;  %v29_v7 = vsel %vm19_vm0, %v18_v5, 0.0  ;;  %v115_v41 = vld [vmem:[%s218_s1] ss:$0 sm:$0xff] }
   0x4   :  { %v116_v43 = vld [vmem:[%s219_s2] ss:$0 sm:$0xff]  ;;  %s152_s1 = smov [#allocation2]  }
   0x5   :  { %s104_s23 = sshll.u32 %s152_s1, 4  ;;  %s105_s23 = int_to_ptr.vmem [resolvable:$true] %s104_s23 }
   0x6   :  { %s128_s2 = scalar_lea.vmem %s105_s23, 512  ;;  %p133_p1 = scmp.lt.s32.totalorder %s105_s23, %s105_s23 }
   0x7   :  { %24 = vadd.xlane.f32.xlu0 %v23_v6  ;;  %30 = vadd.xlane.f32.xlu1 %v29_v7  ;;  %p129_p0 = scmp.ne.s32.totalorder %s105_s23, %s128_s2  ;;  %p134_p2 = scmp.lt.s32.totalorder %s128_s2, %s128_s2 }
   0x9   :  { %p135_p3 = por %p134_p2, %p133_p1 }
   0xb   :  { %p136_p4 = pnand %p135_p3, %p129_p0 }
  0x90   :  { %v22_v8 = vpop.xlane.xlu0 %21  ;;  %v28_v9 = vpop.xlane.xlu1 %27 }
  0x91   :  { %v33_v10 = vmul.f32 0.03125, %v22_v8  ;;  %v35_v11 = vmul.f32 0.03125, %v28_v9 }
  0x93   :  { %v37_v12 = vsub.f32 %v15_v0, %v33_v10  ;;  %v39_v13 = vsub.f32 %v17_v1, %v35_v11 }
  0x94   :  { %v25_v14 = vpop.xlane.xlu0 %24  ;;  %v31_v15 = vpop.xlane.xlu1 %30 }
  0x95   :  { %v34_v16 = vmul.f32 0.03125, %v25_v14  ;;  %v36_v17 = vmul.f32 0.03125, %v31_v15  ;;  %v41_v18 = vmul.f32 %v37_v12, %v37_v12  ;;  %v43_v19 = vmul.f32 %v39_v13, %v39_v13 }
  0x97   :  { %v38_v20 = vsub.f32 %v16_v2, %v34_v16  ;;  %v40_v21 = vsub.f32 %v18_v5, %v36_v17  ;;  %v45_v22 = vsel %vm19_vm0, %v41_v18, 0.0  ;;  %v51_v23 = vsel %vm19_vm0, %v43_v19, 0.0 }
  0x98   :  { %46 = vadd.xlane.f32.xlu0 %v45_v22 }
  0x99   :  { %v42_v24 = vmul.f32 %v38_v20, %v38_v20  ;;  %v44_v25 = vmul.f32 %v40_v21, %v40_v21 }
  0x9b   :  { %v48_v26 = vsel %vm19_vm0, %v42_v24, 0.0  ;;  %v54_v27 = vsel %vm19_vm0, %v44_v25, 0.0 }
  0x9c   :  { %52 = vadd.xlane.f32.xlu0 %v51_v23  ;;  %49 = vadd.xlane.f32.xlu1 %v48_v26 }
  0xa0   :  { %55 = vadd.xlane.f32.xlu1 %v54_v27 }
 0x125   :  { %v47_v28 = vpop.xlane.xlu0 %46 }
 0x126   :  { %v57_v29 = vmul.f32 0.03125, %v47_v28 }
 0x128   :  { %v61_v30 = vadd.f32 1e-05, %v57_v29 }
 0x129   :  { %v50_v31 = vpop.xlane.xlu1 %49  ;;  %v53_v32 = vpop.xlane.xlu0 %52 }
 0x12a   :  { %120 = vrsqrt.f32 %v61_v30  ;;  %v58_v33 = vmul.f32 0.03125, %v50_v31  ;;  %v59_v34 = vmul.f32 0.03125, %v53_v32 }
 0x12c   :  { %v62_v35 = vadd.f32 1e-05, %v58_v33  ;;  %v63_v36 = vadd.f32 1e-05, %v59_v34 }
 0x12d   :  { %v56_v37 = vpop.xlane.xlu1 %55 }
 0x12e   :  { %122 = vrsqrt.f32 %v62_v35  ;;  %v60_v38 = vmul.f32 0.03125, %v56_v37 }
 0x12f   :  { %124 = vrsqrt.f32 %v63_v36 }
 0x130   :  { %v64_v39 = vadd.f32 1e-05, %v60_v38 }
 0x132   :  { %126 = vrsqrt.f32 %v64_v39 }
 0x134   :  { %v121_v40 = vpop.eup %120 }
 0x135   :  { %v69_v42 = vmul.f32 %v121_v40, %v37_v12 }
 0x137   :  { %v80_v44 = vmul.f32 %v115_v41, %v69_v42 }
 0x138   :  { %v123_v45 = vpop.eup %122 }
 0x139   :  { %v125_v46 = vpop.eup %124  ;;  %v91_v47 = vadd.f32 %v116_v43, %v80_v44  ;;  %v70_v48 = vmul.f32 %v123_v45, %v38_v20 }
 0x13a   :  { %v71_v49 = vmul.f32 %v125_v46, %v39_v13 }
 0x13b   :  { %95 = vst.msk [vmem:[#allocation2] sm:$0xff] %vm19_vm0, %v91_v47  ;;  %v81_v50 = vmul.f32 %v115_v41, %v70_v48 }
 0x13c   :  { %v127_v51 = vpop.eup %126  ;;  %v82_v52 = vmul.f32 %v115_v41, %v71_v49 }
 0x13d   :  { %v92_v53 = vadd.f32 %v116_v43, %v81_v50  ;;  %v72_v54 = vmul.f32 %v127_v51, %v40_v21 }
 0x13e   :  { %v93_v55 = vadd.f32 %v116_v43, %v82_v52 }
 0x13f   :  { %96 = vst.msk [vmem:[#allocation2 + $0x8] sm:$0xff] %vm19_vm0, %v92_v53  ;;  %v83_v56 = vmul.f32 %v115_v41, %v72_v54 }
 0x140   :  { %97 = vst.msk [vmem:[#allocation2 + $0x10] sm:$0xff] %vm19_vm0, %v93_v55 }
 0x141   :  { %v94_v57 = vadd.f32 %v116_v43, %v83_v56 }
 0x143   :  { %98 = vst.msk [vmem:[#allocation2 + $0x18] sm:$0xff] %vm19_vm0, %v94_v57 }
 0x144   :  { %139 = shalt.err (!%p136_p4)
}
 0x145   :  { %s140_s26 = scalar_lea.hbm %s220_s3, 512 }
 0x146   :  { %p141_p5 = scmp.ne.s32.totalorder %s220_s3, %s140_s26  ;;  %p144_p6 = scmp.lt.u32.totalorder %s140_s26, %s220_s3 }
 0x148   :  { %p146_p7 = pnand %p144_p6, %p141_p5 }
 0x14a   :  { %149 = shalt.err (!%p146_p7)
}
 0x14b   :  { %s153_s4 = smov 128   ;;  %s154_s5 = smov 8  }
 0x14c   :  { %110 = dma.vmem_to_hbm [thread:$0]  %s105_s23, 512, %s220_s3, [#allocation3], %s153_s4, %s153_s4, %s154_s5  }
 0x14d   :  { %150 = dma.done.wait [#allocation3], 512  }
 0x14e   :  { %151 = vsyncadd [#allocation3], 4294966784 }
 0x14f   :  { %114 = vsyncpa [#allocation3], 1 }

// kernel: closed_call.13
= control target key start
LH: loop header
LB: loop body
LE: loop exit
PB: predicated region body
PF: predicated region fallthrough
CT: control target
= control target key end

     0   :  { %vm25_vm0 = vcmask 261120   ;;  %vm197_vm1 = vcmask 781312   ;;  %s322_s0 = inlined_call_operand.vmem [shape: f32[32,32], index: 0, kind: input, shape index: {}]   ;;  %s323_s3 = inlined_call_operand.vmem [shape: bf16[32,96], index: 3, kind: input, shape index: {}]   ;;  %s324_s1 = inlined_call_operand.vmem [shape: f32[1,32], index: 1, kind: input, shape index: {}]   ;;  %s325_s2 = inlined_call_operand.vmem [shape: f32[1,32], index: 2, kind: input, shape index: {}]   ;;  %s326_s4 = inlined_call_operand.vmem [shape: f32[1,96], index: 4, kind: input, shape index: {}]   ;;  %s327_s5 = inlined_call_operand.vmem [shape: bf16[32,96], index: 5, kind: output, shape index: {}]  }
   0x1   :  { %v21_v0 = vld [vmem:[%s322_s0] sm:$0xff]  ;;  %v23_v1 = vld [vmem:[%s322_s0 + $0x10] sm:$0xff]  ;;  %v22_v2 = vld [vmem:[%s322_s0 + $0x8] sm:$0xff] }
   0x2   :  { %v26_v3 = vsel %vm25_vm0, %v21_v0, 0.0  ;;  %v32_v4 = vsel %vm25_vm0, %v23_v1, 0.0  ;;  %v24_v5 = vld [vmem:[%s322_s0 + $0x18] sm:$0xff]  ;;  %v29_v6 = vsel %vm25_vm0, %v22_v2, 0.0  ;;  %v233_v28 = vld [vmem:[%s323_s3] sm:$0xff]   ;;  %v234_v29 = vld [vmem:[%s323_s3 + $0x8] sm:$0xff]  }
   0x3   :  { %27 = vadd.xlane.f32.xlu0 %v26_v3  ;;  %33 = vadd.xlane.f32.xlu1 %v32_v4  ;;  %v35_v7 = vsel %vm25_vm0, %v24_v5, 0.0  ;;  %v206_v44 = vld [vmem:[%s324_s1] ss:$0 sm:$0xff] }
   0x4   :  { %225 = vmatprep.subr.bf16.mxu0 %v233_v28  ;;  %v207_v50 = vld [vmem:[%s325_s2] ss:$0 sm:$0xff] }
   0x5   :  { %226 = vmatpush3.bf16.msra.mxu0 %v233_v28  ;;  %v208_v62 = vld [vmem:[%s326_s4] ss:$0 sm:$0xff] }
   0x6   :  { %227 = vmatprep.subr.bf16.mxu0 %v234_v29 }
   0x7   :  { %30 = vadd.xlane.f32.xlu0 %v29_v6  ;;  %36 = vadd.xlane.f32.xlu1 %v35_v7 }
   0x9   :  { %228 = vmatpush3.bf16.msra.mxu0 %v234_v29 }
  0x90   :  { %v28_v8 = vpop.xlane.xlu0 %27  ;;  %v34_v9 = vpop.xlane.xlu1 %33 }
  0x91   :  { %v39_v10 = vmul.f32 0.03125, %v28_v8  ;;  %v41_v11 = vmul.f32 0.03125, %v34_v9 }
  0x93   :  { %v43_v12 = vsub.f32 %v21_v0, %v39_v10  ;;  %v45_v13 = vsub.f32 %v23_v1, %v41_v11 }
  0x94   :  { %v31_v14 = vpop.xlane.xlu0 %30  ;;  %v37_v15 = vpop.xlane.xlu1 %36 }
  0x95   :  { %v40_v16 = vmul.f32 0.03125, %v31_v14  ;;  %v42_v17 = vmul.f32 0.03125, %v37_v15  ;;  %v47_v18 = vmul.f32 %v43_v12, %v43_v12  ;;  %v49_v19 = vmul.f32 %v45_v13, %v45_v13 }
  0x97   :  { %v44_v20 = vsub.f32 %v22_v2, %v40_v16  ;;  %v46_v21 = vsub.f32 %v24_v5, %v42_v17  ;;  %v51_v22 = vsel %vm25_vm0, %v47_v18, 0.0  ;;  %v57_v23 = vsel %vm25_vm0, %v49_v19, 0.0 }
  0x98   :  { %52 = vadd.xlane.f32.xlu0 %v51_v22 }
  0x99   :  { %v48_v24 = vmul.f32 %v44_v20, %v44_v20  ;;  %v50_v25 = vmul.f32 %v46_v21, %v46_v21 }
  0x9b   :  { %v54_v26 = vsel %vm25_vm0, %v48_v24, 0.0  ;;  %v60_v27 = vsel %vm25_vm0, %v50_v25, 0.0 }
  0x9c   :  { %58 = vadd.xlane.f32.xlu0 %v57_v23  ;;  %55 = vadd.xlane.f32.xlu1 %v54_v26 }
  0xa0   :  { %61 = vadd.xlane.f32.xlu1 %v60_v27 }
 0x125   :  { %v53_v30 = vpop.xlane.xlu0 %52 }
 0x126   :  { %v63_v31 = vmul.f32 0.03125, %v53_v30 }
 0x128   :  { %v67_v32 = vadd.f32 1e-05, %v63_v31 }
 0x129   :  { %v56_v33 = vpop.xlane.xlu1 %55  ;;  %v59_v34 = vpop.xlane.xlu0 %58 }
 0x12a   :  { %235 = vrsqrt.f32 %v67_v32  ;;  %v64_v35 = vmul.f32 0.03125, %v56_v33  ;;  %v65_v36 = vmul.f32 0.03125, %v59_v34 }
 0x12c   :  { %v68_v37 = vadd.f32 1e-05, %v64_v35  ;;  %v69_v38 = vadd.f32 1e-05, %v65_v36 }
 0x12d   :  { %v62_v39 = vpop.xlane.xlu1 %61 }
 0x12e   :  { %237 = vrsqrt.f32 %v68_v37  ;;  %v66_v40 = vmul.f32 0.03125, %v62_v39 }
 0x12f   :  { %239 = vrsqrt.f32 %v69_v38 }
 0x130   :  { %v70_v41 = vadd.f32 1e-05, %v66_v40 }
 0x132   :  { %241 = vrsqrt.f32 %v70_v41 }
 0x134   :  { %v236_v42 = vpop.eup %235 }
 0x135   :  { %v75_v43 = vmul.f32 %v236_v42, %v43_v12 }
 0x137   :  { %v86_v48 = vmul.f32 %v206_v44, %v75_v43 }
 0x138   :  { %v238_v45 = vpop.eup %237 }
 0x139   :  { %v240_v46 = vpop.eup %239  ;;  %v76_v47 = vmul.f32 %v238_v45, %v44_v20  ;;  %v97_v54 = vadd.f32 %v207_v50, %v86_v48 }
 0x13a   :  { %v77_v49 = vmul.f32 %v240_v46, %v45_v13 }
 0x13b   :  { %v87_v51 = vmul.f32 %v206_v44, %v76_v47 }
 0x13c   :  { %v242_v52 = vpop.eup %241  ;;  %v88_v56 = vmul.f32 %v206_v44, %v77_v49 }
 0x13d   :  { %v78_v53 = vmul.f32 %v242_v52, %v46_v21  ;;  %v98_v55 = vadd.f32 %v207_v50, %v87_v51 }
 0x13e   :  { %v99_v59 = vadd.f32 %v207_v50, %v88_v56 }
 0x13f   :  { %v101_v57 = vpack.c.bf16 %v98_v55, %v97_v54  ;;  %v89_v58 = vmul.f32 %v206_v44, %v78_v53 }
 0x141   :  { %229 = vmatprep.mubr.msk.bf16.mxu0 %vm25_vm0, %v101_v57  ;;  %v100_v60 = vadd.f32 %v207_v50, %v89_v58 }
 0x143   :  { %v102_v61 = vpack.c.bf16 %v100_v60, %v99_v59 }
 0x145   :  { %230 = vmatmul.mubr.msk.bf16.vlgmr.msra.gmra.mrb[0].mxu0 %vm25_vm0, %v102_v61 }
 0x218   :  { %v231_v63 = vpop.f32.mrb[0].mxu0 }
 0x219   :  { %v175_v0 = vadd.f32 %v231_v63, %v208_v62  ;;  %v166_v1 = vpop.f32.mrb[1].mxu0 }
 0x21a   :  { %v167_v2 = vadd.f32 %v208_v62, %v166_v1  ;;  %v232_v3 = vpop.f32.mrb[2].mxu0 }
 0x21b   :  { %v219_v4 = vpack.c.bf16 %v175_v0, %v175_v0  ;;  %v178_v5 = vadd.f32 %v232_v3, %v208_v62  ;;  %v169_v6 = vpop.f32.mrb[3].mxu0 }
 0x21c   :  { %v217_v7 = vpack.c.bf16 %v167_v2, %v167_v2  ;;  %v170_v8 = vadd.f32 %v208_v62, %v169_v6 }
 0x21d   :  { %200 = vst.msk [vmem:[%s327_s5 + $0x8] sm:$0xf] %vm197_vm1, %v219_v4  ;;  %v220_v9 = vpack.c.bf16 %v178_v5, %v178_v5 }
 0x21e   :  { %198 = vst.msk [vmem:[%s327_s5] sm:$0xf] %vm197_vm1, %v217_v7  ;;  %v218_v10 = vpack.c.bf16 %v170_v8, %v170_v8 }
 0x21f   :  { %201 = vst.msk [vmem:[%s327_s5 + $0xc] sm:$0xf] %vm197_vm1, %v220_v9 }
 0x220   :  { %199 = vst.msk [vmem:[%s327_s5 + $0x4] sm:$0xf] %vm197_vm1, %v218_v10 }

// kernel: closed_call.14
= control target key start
LH: loop header
LB: loop body
LE: loop exit
PB: predicated region body
PF: predicated region fallthrough
CT: control target
= control target key end

     0   :  { %s1265_s24 = smov 0   ;;  %s1267_s25 = smov 0   ;;  %s1454_s0 = inlined_call_operand.vmem [shape: bf16[2,16,96], index: 0, kind: input, shape index: {}]   ;;  %s1455_s1 = inlined_call_operand.vmem [shape: f32[2,16,32], index: 1, kind: input, shape index: {}]   ;;  %s1456_s2 = inlined_call_operand.vmem [shape: f32[16,32], index: 2, kind: input, shape index: {}]   ;;  %s1457_s3 = inlined_call_operand.vmem [shape: f32[16,32], index: 3, kind: input, shape index: {}]   ;;  %s1458_s4 = inlined_call_operand.vmem [shape: f32[2,1,16], index: 4, kind: input, shape index: {}]   ;;  %s1459_s5 = inlined_call_operand.vmem [shape: bf16[32,32], index: 5, kind: input, shape index: {}]   ;;  %s1460_s6 = inlined_call_operand.vmem [shape: f32[1,32], index: 6, kind: input, shape index: {}]   ;;  %s1461_s7 = inlined_call_operand.vmem [shape: f32[2,16,32], index: 7, kind: output, shape index: {}]  }
   0x1   :  { %s1269_s26 = smov 0  }
   0x2 LB: > { %s29_s27 = sadd.s32 1, %s1205_s25  ;;  %p1014_p0 = scmp.ge.s32.totalorder %s1209_s26, 1  ;;  %s1209_s26 = sphi %s1269_s26, %s17_s26   ;;  %s1205_s25 = sphi %s1267_s25, %s1463_s25   ;;  %s1201_s24 = sphi %s1265_s24, %s1462_s24  }
   0x3   : > { %p31_p1 = scmp.ge.s32.totalorder %s29_s27, 2  ;;  %p276_p2 = scmp.lt.s32.totalorder %s1209_s26, 3 }
   0x5   : > { %s1465_s27 = smov (%p31_p1, %s29_s27), 0  ;;  %p277_p3 = pnand %p1014_p0, %p276_p2 }
   0x6   : > { %p324_p4 = scmp.lt.s32.totalorder (!%p277_p3), %s1201_s24, 1  ;;  %v1286_v0 = vld [vmem:[%s1456_s2] sm:$0xff] (!%p277_p3)  ;;  %s1211_s30 = smov (!%p277_p3), 32   ;;  %v1295_v1 = vld [vmem:[%s1456_s2 + $0x8] sm:$0xff] (!%p277_p3)  ;;  %vm389_vm0 = vcmask (!%p277_p3), 64512   ;;  %v1216_v23 = vmov (!%p277_p3), 0.0  }
   0x7   : > { %280 = sbr.rel (%p277_p3) target bundleno = 2081 (0x821), region = 48  ;;  %405 = vrot.lane.b32.xlu1 (!%p277_p3), %v1286_v0, %s1211_s30  ;;  %s1212_s14 = smov (!%p277_p3), 88   ;;  %v1316_v13 = vld [vmem:[%s1457_s3 + $0x8] sm:$0xff] (!%p277_p3)  ;;  %v1321_v14 = vld [vmem:[%s1457_s3] sm:$0xff] (!%p277_p3)  ;;  %1056 = vmatprep.subr.bf16.mxu0 (!%p277_p3), %v1216_v23  ;;  %vm1217_vm1 = vmmov (!%p277_p3), 0   ;;  %vm451_vm2 = vcmask (!%p277_p3), 130048  }
   0x8   : > { %s1213_s15 = smov (!%p277_p3), 104   ;;  %s1214_s20 = smov (!%p277_p3), 8   ;;  %1062 = vmatprep.subr.bf16.mxu1 (!%p277_p3), %v1216_v23  ;;  %1058 = vmatprep.mubr.msk.bf16.mxu0 (!%p277_p3), %vm1217_vm1, %v1216_v23  ;;  %vm816_vm3 = vcmask (!%p277_p3), 261248   ;;  %vm845_vm4 = vcmask (!%p277_p3), 261120  }
   0x9   : > { %s1215_s21 = smov (!%p277_p3), 120   ;;  %1064 = vmatprep.mubr.msk.bf16.mxu1 (!%p277_p3), %vm1217_vm1, %v1216_v23  ;;  %s1218_s22 = smov (!%p277_p3), 96  }
   0xa   : > { %s1219_s23 = smov (!%p277_p3), 72   ;;  %s1220_s28 = smov (!%p277_p3), 112  }
   0xb   : > { %407 = vrot.lane.b32.xlu1 (!%p277_p3), %v1295_v1, %s1211_s30  ;;  %s1223_s11 = smov (!%p277_p3), 80   ;;  %s1224_s12 = smov (!%p277_p3), 64  }
   0xe   : > { %s1467_s24 = smov (!%p324_p4, %s1201_s24), 1 }
   0xf   : > { %s1034_s10 = sshll.u32 %s1467_s24, 3  ;;  %s341_s9 = scalar_lea.vmem %s1458_s4, %s1467_s24 }
  0x10   : > { %s1301_s13 = scalar_lea.vmem %s1454_s0, %s1034_s10  ;;  %v1371_v55 = vld [vmem:[%s341_s9] ss:$0 sm:$0xff]  ;;  %s1221_s10 = smov 48  }
  0x11   : > { %v1304_v2 = vld [vmem:[%s1301_s13] sm:$0xff]   ;;  %s1035_s17 = sshll.u32 %s1467_s24, 4 }
  0x12   : > { %v371_v3 = vunpack.c.l.bf16 %v1304_v2  ;;  %v372_v4 = vunpack.c.h.bf16 %v1304_v2  ;;  %v1038_v7 = vld [vmem:[%s1301_s13] sm:$0xff]   ;;  %s350_s29 = scalar_lea.vmem %s1461_s7, %s1035_s17 }
  0x13   : > { %v1039_v15 = vunpack.c.l.bf16 %v1038_v7  ;;  %v1040_v16 = vunpack.c.h.bf16 %v1038_v7  ;;  %v1336_v29 = vld [vmem:[%s1301_s13] sm:$0xff]  }
  0x14   : > { %v1126_v5 = vpack.i.bf16 %v372_v4, %v371_v3  ;;  %v586_v32 = vunpack.c.l.bf16 %v1336_v29  ;;  %v587_v33 = vunpack.c.h.bf16 %v1336_v29 }
  0x15   : > { %v1141_v21 = vpack.i.bf16 %v1040_v16, %v1039_v15  ;;  %v1353_v44 = vmul.f32 %v1040_v16, %v1295_v1  ;;  %v1357_v46 = vmul.f32 %v1039_v15, %v1286_v0 }
  0x16   : > { %1127 = vrot.lane.b32.xlu0 %v1126_v5, %s1212_s14  ;;  %v1146_v35 = vpack.i.bf16 %v587_v33, %v586_v32 }
  0x1a   : > { %1132 = vrot.lane.b32.xlu0 %v1126_v5, %s1213_s15 }
  0x79   : > { %v406_v22 = vpop.permute.xlu1 %405 }
  0x7a   : > { %v411_v25 = vmul.f32 %v406_v22, %v371_v3 }
  0x7d   : > { %v408_v24 = vpop.permute.xlu1 %407 }
  0x7e   : > { %v412_v26 = vmul.f32 %v408_v24, %v372_v4 }
  0x88   : > { %v1128_v6 = vpop.permute.xlu0 %1127 }
  0x89   : > { %v1130_v9 = vunpack.i.h.bf16 %v1128_v6  ;;  %v1129_v10 = vunpack.i.l.bf16 %v1128_v6 }
  0x8c   : > { %v1133_v8 = vpop.permute.xlu0 %1132 }
  0x8d   : > { %v1135_v11 = vunpack.i.h.bf16 %v1133_v8  ;;  %v1134_v12 = vunpack.i.l.bf16 %v1133_v8 }
  0x8f   : > { %v428_v17 = vsel %vm389_vm0, %v1130_v9, %v1135_v11  ;;  %v427_v18 = vsel %vm389_vm0, %v1129_v10, %v1134_v12 }
  0x90   : > { %v430_v19 = vmul.f32 %v428_v17, %v1316_v13  ;;  %v429_v20 = vmul.f32 %v427_v18, %v1321_v14 }
  0x92   : > { %435 = vrot.lane.b32.xlu1 %v430_v19, %s1211_s30  ;;  %433 = vrot.lane.b32.xlu0 %v429_v20, %s1211_s30 }
  0x96   : > { %1142 = vrot.lane.b32.xlu1 %v1141_v21, %s1214_s20  ;;  %1137 = vrot.lane.b32.xlu0 %v1141_v21, %s1215_s21  ;;  %s337_s20 = scalar_lea.vmem %s1455_s1, %s1035_s17 }
  0x9a   : > { %1147 = vrot.lane.b32.xlu1 %v1146_v35, %s1219_s23 }
  0x9e   : > { %661 = vrot.lane.b32.xlu1 %v1321_v14, %s1220_s28 }
  0xa2   : > { %1162 = vrot.lane.b32.xlu1 %v1141_v21, %s1215_s21 }
 0x104   : > { %v436_v27 = vpop.permute.xlu1 %435  ;;  %v434_v28 = vpop.permute.xlu0 %433 }
 0x105   : > { %v440_v30 = vadd.f32 %v436_v27, %v412_v26  ;;  %v439_v31 = vadd.f32 %v434_v28, %v411_v25 }
 0x107   : > { %v441_v34 = vpack.c.bf16 %v440_v30, %v439_v31 }
 0x108   : > { %v1143_v36 = vpop.permute.xlu1 %1142  ;;  %v1138_v37 = vpop.permute.xlu0 %1137 }
 0x109   : > { %449 = vrot.lane.b32.xlu0 %v441_v34, %s1218_s22  ;;  %v1145_v38 = vunpack.i.h.bf16 %v1143_v36  ;;  %v1144_v39 = vunpack.i.l.bf16 %v1143_v36  ;;  %v1140_v40 = vunpack.i.h.bf16 %v1138_v37  ;;  %v1139_v41 = vunpack.i.l.bf16 %v1138_v37 }
 0x10b   : > { %v391_v42 = vsel %vm389_vm0, %v1140_v40, %v1145_v38  ;;  %v390_v43 = vsel %vm389_vm0, %v1139_v41, %v1144_v39 }
 0x10c   : > { %v393_v45 = vmul.f32 %v1316_v13, %v391_v42  ;;  %v392_v47 = vmul.f32 %v1321_v14, %v390_v43  ;;  %v1148_v3 = vpop.permute.xlu1 %1147 }
 0x10d   : > { %1152 = vrot.lane.b32.xlu0 %v1146_v35, %s1212_s14  ;;  %v1149_v5 = vunpack.i.l.bf16 %v1148_v3  ;;  %v1150_v9 = vunpack.i.h.bf16 %v1148_v3 }
 0x10e   : > { %v395_v48 = vadd.f32 %v393_v45, %v1353_v44  ;;  %v394_v49 = vadd.f32 %v392_v47, %v1357_v46 }
 0x110   : > { %v396_v52 = vmul.f32 0.25, %v394_v49  ;;  %v397_v53 = vmul.f32 0.25, %v395_v48  ;;  %v662_v7 = vpop.permute.xlu1 %661 }
 0x111   : > { %663 = vrot.lane.b32.xlu0 %v1316_v13, %s1220_s28 }
 0x112   : > { %v398_v54 = vpack.c.bf16 %v397_v53, %v396_v52 }
 0x114   : > { %v1163_v16 = vpop.permute.xlu1 %1162 }
 0x115   : > { %1157 = vrot.lane.b32.xlu0 %v1141_v21, %s1213_s15  ;;  %v1164_v18 = vunpack.i.l.bf16 %v1163_v16  ;;  %v1165_v20 = vunpack.i.h.bf16 %v1163_v16 }
 0x17b   : > { %v450_v50 = vpop.permute.xlu0 %449 }
 0x17c   : > { %v456_v51 = vsel %vm451_vm2, %v450_v50, 0 }
 0x17d   : > { %1057 = vmatpush3.bf16.xpose.msra.mxu0 %v456_v51 }
 0x17e   : > { %1074 = vmatprep.subr.bf16.mxu0 %v1216_v23 }
 0x17f   : > { %v1153_v4 = vpop.permute.xlu0 %1152 }
 0x180   : > { %v1154_v6 = vunpack.i.l.bf16 %v1153_v4  ;;  %v1155_v10 = vunpack.i.h.bf16 %v1153_v4 }
 0x182   : > { %v657_v8 = vsel %vm389_vm0, %v1149_v5, %v1154_v6  ;;  %v658_v15 = vsel %vm389_vm0, %v1150_v9, %v1155_v10 }
 0x183   : > { %v667_v11 = vmul.f32 %v662_v7, %v657_v8  ;;  %v664_v12 = vpop.permute.xlu0 %663 }
 0x184   : > { %1059 = vmatmul.mubr.msk.bf16.vlgmr.msra.gmra.mrb[0].mxu0 %vm451_vm2, %v398_v54 }
 0x185   : > { %1076 = vmatprep.mubr.msk.bf16.mxu0 %vm1217_vm1, %v1216_v23 }
 0x187   : > { %v1158_v17 = vpop.permute.xlu0 %1157 }
 0x188   : > { %v1160_v21 = vunpack.i.h.bf16 %v1158_v17 }
 0x18a   : > { %v605_v26 = vsel %vm389_vm0, %v1160_v21, %v1165_v20 }
 0x257   : > { %v492_v56 = vpop.f32.mrb[0].mxu0 }
 0x258   : > { %v493_v57 = vadd.f32 %v1371_v55, %v492_v56  ;;  %v1060_v58 = vpop.f32.mrb[1].mxu0 }
 0x259   : > { %v495_v59 = vpop.f32.mrb[2].mxu0 }
 0x25a   : > { %v496_v60 = vadd.f32 %v1371_v55, %v495_v59  ;;  %v1061_v61 = vpop.f32.mrb[3].mxu0  ;;  %v499_v62 = vsel %vm451_vm2, %v493_v57, -inf }
 0x25b   : > { %500 = vmax.xlane.f32.xlu1 %v499_v62 }
 0x25c   : > { %v502_v63 = vsel %vm451_vm2, %v496_v60, -inf }
 0x25d   : > { %503 = vmax.xlane.f32.xlu0 %v502_v63 }
 0x26c   : > { %608 = vrot.lane.b32.xlu1 %v1321_v14, %s1220_s28  ;;  %v668_v14 = vmul.f32 %v664_v12, %v658_v15 }
 0x270   : > { %635 = vrot.lane.b32.xlu1 %v1286_v0, %s1211_s30  ;;  %v1159_v0 = vunpack.i.l.bf16 %v1158_v17 }
 0x272   : > { %v604_v22 = vsel %vm389_vm0, %v1159_v0, %v1164_v18 }
 0x273   : > { %610 = vrot.lane.b32.xlu0 %v1316_v13, %s1220_s28 }
 0x274   : > { %671 = vrot.lane.b32.xlu1 %v667_v11, %s1221_s10 }
 0x277   : > { %637 = vrot.lane.b32.xlu0 %v1295_v1, %s1211_s30  ;;  %s1222_s30 = smov 16  }
 0x27b   : > { %673 = vrot.lane.b32.xlu0 %v668_v14, %s1221_s10 }
 0x2e8   : > { %v501_v19 = vpop.xlane.xlu1 %500 }
 0x2e9   : > { %v505_v30 = vsub.f32 %v493_v57, %v501_v19 }
 0x2ea   : > { %v504_v13 = vpop.xlane.xlu0 %503 }
 0x2eb   : > { %v506_v1 = vsub.f32 %v496_v60, %v504_v13  ;;  %v507_v34 = vmul.f32 1.442695, %v505_v30 }
 0x2ec   : > { %v609_v24 = vpop.permute.xlu1 %608 }
 0x2ed   : > { %v614_v25 = vmul.f32 %v609_v24, %v604_v22  ;;  %v509_v31 = vmul.f32 1.442695, %v506_v1 }
 0x2ee   : > { %v611_v27 = vpop.permute.xlu0 %610 }
 0x2ef   : > { %v615_v28 = vmul.f32 %v611_v27, %v605_v26  ;;  %618 = vrot.lane.b32.xlu1 %v614_v25, %s1222_s30  ;;  %1171 = vpow2.f32 %v509_v31  ;;  %v1167_v31 = vld [vmem:[%s1459_s5] sm:$0xff]  }
 0x2f0   : > { %1173 = vpow2.f32 %v507_v34  ;;  %v636_v39 = vpop.permute.xlu1 %635  ;;  %v1168_v34 = vld [vmem:[%s1459_s5 + $0x8] sm:$0xff]  }
 0x2f1   : > { %620 = vrot.lane.b32.xlu0 %v615_v28, %s1222_s30  ;;  %v641_v41 = vmul.f32 %v636_v39, %v586_v32 }
 0x2f2   : > { %v638_v40 = vpop.permute.xlu0 %637 }
 0x2f3   : > { %v642_v42 = vmul.f32 %v638_v40, %v587_v33 }
 0x2f4   : > { %v672_v43 = vpop.permute.xlu1 %671 }
 0x2f5   : > { %v677_v47 = vadd.f32 %v672_v43, %v641_v41 }
 0x2f6   : > { %v674_v45 = vpop.permute.xlu0 %673 }
 0x2f7   : > { %v678_v48 = vadd.f32 %v674_v45, %v642_v42 }
 0x2f9   : > { %v1172_v35 = vpop.eup %1171  ;;  %v679_v49 = vpack.c.bf16 %v678_v48, %v677_v47  ;;  %v890_v47 = vld [vmem:[%s337_s20] sm:$0xff] }
 0x2fa   : > { %v1174_v36 = vpop.eup %1173  ;;  %v514_v37 = vsel %vm451_vm2, %v1172_v35, 0.0 }
 0x2fb   : > { %v511_v38 = vsel %vm451_vm2, %v1174_v36, 0.0 }
 0x310   : > { %515 = vadd.xlane.f32.xlu0 %v514_v37 }
 0x313   : > { %512 = vadd.xlane.f32.xlu1 %v511_v38 }
 0x324   : > { %684 = vrot.lane.b32.xlu1 %v679_v49, %s1223_s11 }
 0x326   : > { %527 = vrot.lane.b32.xlu0 %v1304_v2, %s1224_s12 }
 0x361   : > { %v619_v50 = vpop.permute.xlu1 %618 }
 0x362   : > { %v624_v51 = vadd.f32 %v619_v50, %v1357_v46 }
 0x363   : > { %v621_v52 = vpop.permute.xlu0 %620 }
 0x364   : > { %v625_v53 = vadd.f32 %v621_v52, %v1353_v44  ;;  %v626_v32 = vmul.f32 0.25, %v624_v51  ;;  %v891_v51 = vld [vmem:[%s337_s20 + $0x8] sm:$0xff] }
 0x366   : > { %v627_v54 = vmul.f32 0.25, %v625_v53 }
 0x368   : > { %v628_v56 = vpack.c.bf16 %v627_v54, %v626_v32 }
 0x36a   : > { %681 = vrot.lane.b32.xlu1 %v628_v56, %s1220_s28 }
 0x39d   : > { %v516_v33 = vpop.xlane.xlu0 %515 }
 0x39e   : > { %1175 = vrcp.f32 %v516_v33 }
 0x3a0   : > { %v513_v57 = vpop.xlane.xlu1 %512 }
 0x3a1   : > { %1177 = vrcp.f32 %v513_v57  ;;  %v528_v58 = vpop.permute.xlu0 %527 }
 0x3a2   : > { %1063 = vmatpush3.bf16.msra.mxu1 %v528_v58 }
 0x3a3   : > { %1068 = vmatprep.subr.bf16.mxu1 %v1216_v23 }
 0x3a4   : > { %v685_v61 = vpop.permute.xlu1 %684 }
 0x3a5   : > { %v690_v44 = vsel %vm451_vm2, %v685_v61, 0 }
 0x3a8   : > { %v1176_v2 = vpop.eup %1175 }
 0x3a9   : > { %v520_v46 = vmul.f32 %v1176_v2, %v1172_v35 }
 0x3ab   : > { %v1178_v59 = vpop.eup %1177 }
 0x3ac   : > { %v519_v60 = vmul.f32 %v1178_v59, %v1174_v36 }
 0x3ae   : > { %v521_v62 = vpack.c.bf16 %v520_v46, %v519_v60 }
 0x3b0   : > { %1065 = vmatmul.mubr.msk.bf16.vlgmr.msra.gmra.mrb[0].mxu1 %vm451_vm2, %v521_v62 }
 0x3b1   : > { %1069 = vmatpush3.bf16.xpose.msra.mxu1 %v690_v44  ;;  %1070 = vmatprep.mubr.msk.bf16.mxu1 %vm1217_vm1, %v1216_v23 }
 0x3b2   : > { %1080 = vmatprep.subr.bf16.mxu1 %v1216_v23 }
 0x3dc   : > { %v682_v63 = vpop.permute.xlu1 %681 }
 0x3dd   : > { %1071 = vmatmul.mubr.msk.bf16.vlgmr.msra.gmra.mrb[4].mxu1 %vm451_vm2, %v682_v63 }
 0x3de   : > { %1084 = vmatprep.mubr.msk.bf16.mxu1 %vm1217_vm1, %v1216_v23  ;;  %1081 = vmatpush3.bf16.msra.mxu1 %v1167_v31 }
 0x3df   : > { %1082 = vmatprep.subr.bf16.mxu1 %v1216_v23  ;;  %v1028_v23 = vld [vmem:[%s1460_s6] ss:$0 sm:$0xff] }
 0x3e2   : > { %1083 = vmatpush3.bf16.msra.mxu1 %v1168_v34 }
 0x483   : > { %v567_v3 = vpop.f32.mrb[0].mxu1 }
 0x484   : > { %574 = vst.msk [vmem:[#allocation2] sm:$0xff] %vm451_vm2, %v567_v3  ;;  %v1066_v4 = vpop.f32.mrb[1].mxu1 }
 0x485   : > { %v570_v5 = vpop.f32.mrb[2].mxu1 }
 0x486   : > { %575 = vst.msk [vmem:[#allocation2 + $0x8] sm:$0xff] %vm451_vm2, %v570_v5  ;;  %v1067_v6 = vpop.f32.mrb[3].mxu1 }
 0x4b0   : > { %v726_v7 = vpop.f32.mrb[4].mxu1 }
 0x4b1   : > { %v727_v8 = vadd.f32 %v1371_v55, %v726_v7  ;;  %v1072_v9 = vpop.f32.mrb[5].mxu1 }
 0x4b2   : > { %v729_v10 = vpop.f32.mrb[6].mxu1 }
 0x4b3   : > { %v730_v11 = vadd.f32 %v1371_v55, %v729_v10  ;;  %v1073_v12 = vpop.f32.mrb[7].mxu1  ;;  %v733_v15 = vsel %vm451_vm2, %v727_v8, -inf }
 0x4b4   : > { %734 = vmax.xlane.f32.xlu0 %v733_v15 }
 0x4b5   : > { %v736_v14 = vsel %vm451_vm2, %v730_v11, -inf }
 0x4b6   : > { %737 = vmax.xlane.f32.xlu1 %v736_v14 }
 0x4c7   : > { %761 = vrot.lane.b32.xlu1 %v1336_v29, %s1221_s10 }
 0x541   : > { %v735_v16 = vpop.xlane.xlu0 %734 }
 0x542   : > { %v739_v17 = vsub.f32 %v727_v8, %v735_v16 }
 0x543   : > { %v738_v18 = vpop.xlane.xlu1 %737 }
 0x544   : > { %v741_v0 = vmul.f32 1.442695, %v739_v17  ;;  %v740_v19 = vsub.f32 %v730_v11, %v738_v18 }
 0x546   : > { %1179 = vpow2.f32 %v741_v0  ;;  %v743_v20 = vmul.f32 1.442695, %v740_v19 }
 0x547   : > { %v762_v24 = vpop.permute.xlu1 %761 }
 0x548   : > { %1181 = vpow2.f32 %v743_v20  ;;  %1075 = vmatpush3.bf16.msra.mxu0 %v762_v24 }
 0x550   : > { %v1180_v21 = vpop.eup %1179 }
 0x551   : > { %v745_v55 = vsel %vm451_vm2, %v1180_v21, 0.0 }
 0x552   : > { %v1182_v13 = vpop.eup %1181  ;;  %746 = vadd.xlane.f32.xlu0 %v745_v55 }
 0x553   : > { %v748_v22 = vsel %vm451_vm2, %v1182_v13, 0.0 }
 0x556   : > { %749 = vadd.xlane.f32.xlu0 %v748_v22 }
 0x5df   : > { %v747_v25 = vpop.xlane.xlu0 %746 }
 0x5e0   : > { %1183 = vrcp.f32 %v747_v25 }
 0x5e3   : > { %v750_v29 = vpop.xlane.xlu0 %749 }
 0x5e4   : > { %1185 = vrcp.f32 %v750_v29 }
 0x5ea   : > { %v1184_v26 = vpop.eup %1183 }
 0x5eb   : > { %v753_v28 = vmul.f32 %v1184_v26, %v1180_v21 }
 0x5ee   : > { %v1186_v27 = vpop.eup %1185 }
 0x5ef   : > { %v754_v1 = vmul.f32 %v1186_v27, %v1182_v13 }
 0x5f1   : > { %v755_v30 = vpack.c.bf16 %v754_v1, %v753_v28 }
 0x5f3   : > { %1077 = vmatmul.mubr.msk.bf16.vlgmr.msra.gmra.mrb[4].mxu0 %vm451_vm2, %v755_v30 }
 0x6c6   : > { %v801_v35 = vpop.f32.mrb[4].mxu0 }
 0x6c7   : > { %810 = vrot.lane.b32.xlu0 %v801_v35, %s1222_s30  ;;  %v1078_v36 = vpop.f32.mrb[5].mxu0 }
 0x6c8   : > { %v804_v37 = vpop.f32.mrb[6].mxu0 }
 0x6c9   : > { %812 = vrot.lane.b32.xlu1 %v804_v37, %s1222_s30  ;;  %v1079_v38 = vpop.f32.mrb[7].mxu0 }
 0x739   : > { %v811_v39 = vpop.permute.xlu0 %810 }
 0x73a   : > { %817 = vst.msk [vmem:[#allocation2] sm:$0xff] %vm816_vm3, %v811_v39 }
 0x73b   : > { %v813_v40 = vpop.permute.xlu1 %812 }
 0x73c   : > { %818 = vst.msk [vmem:[#allocation2 + $0x8] sm:$0xff] %vm816_vm3, %v813_v40 }
 0x741   : > { %v819_v41 = vld [vmem:[#allocation2] sm:$0xff] }
 0x743   : > { %v820_v42 = vld [vmem:[#allocation2 + $0x8] sm:$0xff] }
 0x744   : > { %v821_v43 = vpack.c.bf16 %v820_v42, %v819_v41 }
 0x746   : > { %1085 = vmatmul.mubr.msk.bf16.vlgmr.msra.gmra.mrb[8].mxu1 %vm845_vm4, %v821_v43 }
 0x819   : > { %v883_v45 = vpop.f32.mrb[8].mxu1 }
 0x81a   : > { %v884_v48 = vadd.f32 %v1028_v23, %v883_v45  ;;  %v1086_v49 = vpop.f32.mrb[9].mxu1 }
 0x81b   : > { %v886_v50 = vpop.f32.mrb[10].mxu1 }
 0x81c   : > { %v892_v52 = vadd.f32 %v890_v47, %v884_v48  ;;  %v887_v53 = vadd.f32 %v1028_v23, %v886_v50  ;;  %v1087_v32 = vpop.f32.mrb[11].mxu1 }
 0x81e   : > { %894 = vst.msk [vmem:[%s350_s29] sm:$0xff] %vm845_vm4, %v892_v52  ;;  %v893_v54 = vadd.f32 %v891_v51, %v887_v53 }
 0x820   : > { %895 = vst.msk [vmem:[%s350_s29 + $0x8] sm:$0xff] %vm845_vm4, %v893_v54 }
 0x821 PF: > { %s17_s26 = sadd.s32 1, %s1209_s26   ;;  %s1462_s24 = smov %s1205_s25 }
 0x822   : > { %p14_p5 = scmp.ge.s32.totalorder %s17_s26, 4   ;;  %s1463_s25 = smov %s1465_s27 }
 0x824   :  { %16 = sbr.rel (!%p14_p5) target bundleno = 2 (0x2), region = 87 }

// kernel: closed_call.15
= control target key start
LH: loop header
LB: loop body
LE: loop exit
PB: predicated region body
PF: predicated region fallthrough
CT: control target
= control target key end

     0   :  { %vm35_vm0 = vcmask 261120   ;;  %vm274_vm1 = vcmask 523264   ;;  %s578_s0 = inlined_call_operand.vmem [shape: f32[32,32], index: 0, kind: input, shape index: {}]   ;;  %s579_s3 = inlined_call_operand.vmem [shape: bf16[32,64], index: 3, kind: input, shape index: {}]   ;;  %s580_s1 = inlined_call_operand.vmem [shape: f32[1,32], index: 1, kind: input, shape index: {}]   ;;  %s581_s2 = inlined_call_operand.vmem [shape: f32[1,32], index: 2, kind: input, shape index: {}]   ;;  %s582_s5 = inlined_call_operand.vmem [shape: bf16[64,32], index: 5, kind: input, shape index: {}]   ;;  %s583_s4 = inlined_call_operand.vmem [shape: f32[1,64], index: 4, kind: input, shape index: {}]   ;;  %s584_s6 = inlined_call_operand.vmem [shape: f32[1,32], index: 6, kind: input, shape index: {}]   ;;  %s585_s7 = inlined_call_operand.vmem [shape: f32[32,32], index: 7, kind: output, shape index: {}]  }
   0x1   :  { %v483_v0 = vld [vmem:[%s578_s0] sm:$0xff]  ;;  %v488_v1 = vld [vmem:[%s578_s0 + $0x8] sm:$0xff]  ;;  %v493_v2 = vld [vmem:[%s578_s0 + $0x10] sm:$0xff] }
   0x2   :  { %v36_v3 = vsel %vm35_vm0, %v483_v0, 0.0  ;;  %v500_v4 = vld [vmem:[%s578_s0 + $0x18] sm:$0xff]  ;;  %v42_v5 = vsel %vm35_vm0, %v493_v2, 0.0  ;;  %v39_v6 = vsel %vm35_vm0, %v488_v1, 0.0  ;;  %v417_v28 = vld [vmem:[%s579_s3] sm:$0xff]   ;;  %v418_v29 = vld [vmem:[%s579_s3 + $0x8] sm:$0xff]  }
   0x3   :  { %37 = vadd.xlane.f32.xlu0 %v36_v3  ;;  %43 = vadd.xlane.f32.xlu1 %v42_v5  ;;  %v45_v7 = vsel %vm35_vm0, %v500_v4, 0.0  ;;  %v372_v44 = vld [vmem:[%s580_s1] ss:$0 sm:$0xff]  ;;  %v420_v5 = vld [vmem:[%s582_s5 + $0x8] sm:$0xff]  }
   0x4   :  { %396 = vmatprep.subr.bf16.mxu0 %v417_v28  ;;  %v373_v49 = vld [vmem:[%s581_s2] ss:$0 sm:$0xff] }
   0x5   :  { %397 = vmatpush3.bf16.msra.mxu0 %v417_v28  ;;  %v419_v3 = vld [vmem:[%s582_s5] sm:$0xff]  }
   0x6   :  { %398 = vmatprep.subr.bf16.mxu0 %v418_v29  ;;  %404 = vmatprep.subr.bf16.mxu1 %v419_v3 }
   0x7   :  { %40 = vadd.xlane.f32.xlu0 %v39_v6  ;;  %46 = vadd.xlane.f32.xlu1 %v45_v7  ;;  %v421_v6 = vld [vmem:[%s582_s5 + $0x10] sm:$0xff]   ;;  %v422_v7 = vld [vmem:[%s582_s5 + $0x18] sm:$0xff]  }
   0x8   :  { %405 = vmatpush3.bf16.msra.mxu1 %v419_v3 }
   0x9   :  { %399 = vmatpush3.bf16.msra.mxu0 %v418_v29  ;;  %406 = vmatprep.subr.bf16.mxu1 %v420_v5 }
   0xc   :  { %407 = vmatpush3.bf16.msra.mxu1 %v420_v5 }
   0xd   :  { %408 = vmatprep.subr.bf16.mxu1 %v421_v6 }
  0x10   :  { %409 = vmatpush3.bf16.msra.mxu1 %v421_v6 }
  0x11   :  { %410 = vmatprep.subr.bf16.mxu1 %v422_v7 }
  0x14   :  { %411 = vmatpush3.bf16.msra.mxu1 %v422_v7 }
  0x90   :  { %v38_v8 = vpop.xlane.xlu0 %37  ;;  %v44_v9 = vpop.xlane.xlu1 %43 }
  0x91   :  { %v49_v10 = vmul.f32 0.03125, %v38_v8  ;;  %v51_v11 = vmul.f32 0.03125, %v44_v9  ;;  %v439_v8 = vmov 0.0   ;;  %v374_v9 = vld [vmem:[%s583_s4] ss:$0 sm:$0xff] }
  0x92   :  { %117 = vst.msk [vmem:[#allocation3 + $0x10] sm:$0xff] %vm35_vm0, %v439_v8  ;;  %115 = vst.msk [vmem:[#allocation3] sm:$0xff] %vm35_vm0, %v439_v8 }
  0x93   :  { %v53_v12 = vsub.f32 %v483_v0, %v49_v10  ;;  %v55_v13 = vsub.f32 %v493_v2, %v51_v11  ;;  %116 = vst.msk [vmem:[#allocation3 + $0x8] sm:$0xff] %vm35_vm0, %v439_v8  ;;  %118 = vst.msk [vmem:[#allocation3 + $0x18] sm:$0xff] %vm35_vm0, %v439_v8 }
  0x94   :  { %v41_v14 = vpop.xlane.xlu0 %40  ;;  %v47_v15 = vpop.xlane.xlu1 %46 }
  0x95   :  { %v50_v16 = vmul.f32 0.03125, %v41_v14  ;;  %v52_v17 = vmul.f32 0.03125, %v47_v15  ;;  %v57_v18 = vmul.f32 %v53_v12, %v53_v12  ;;  %v59_v19 = vmul.f32 %v55_v13, %v55_v13 }
  0x97   :  { %v54_v20 = vsub.f32 %v488_v1, %v50_v16  ;;  %v56_v21 = vsub.f32 %v500_v4, %v52_v17  ;;  %v61_v22 = vsel %vm35_vm0, %v57_v18, 0.0  ;;  %v67_v23 = vsel %vm35_vm0, %v59_v19, 0.0 }
  0x98   :  { %62 = vadd.xlane.f32.xlu0 %v61_v22 }
  0x99   :  { %v58_v24 = vmul.f32 %v54_v20, %v54_v20  ;;  %v60_v25 = vmul.f32 %v56_v21, %v56_v21 }
  0x9b   :  { %v64_v26 = vsel %vm35_vm0, %v58_v24, 0.0  ;;  %v70_v27 = vsel %vm35_vm0, %v60_v25, 0.0 }
  0x9c   :  { %68 = vadd.xlane.f32.xlu0 %v67_v23  ;;  %65 = vadd.xlane.f32.xlu1 %v64_v26 }
  0xa0   :  { %71 = vadd.xlane.f32.xlu1 %v70_v27 }
 0x125   :  { %v63_v30 = vpop.xlane.xlu0 %62 }
 0x126   :  { %v73_v31 = vmul.f32 0.03125, %v63_v30 }
 0x128   :  { %v77_v32 = vadd.f32 1e-05, %v73_v31 }
 0x129   :  { %v66_v33 = vpop.xlane.xlu1 %65  ;;  %v69_v34 = vpop.xlane.xlu0 %68 }
 0x12a   :  { %423 = vrsqrt.f32 %v77_v32  ;;  %v74_v35 = vmul.f32 0.03125, %v66_v33  ;;  %v75_v36 = vmul.f32 0.03125, %v69_v34 }
 0x12c   :  { %v78_v37 = vadd.f32 1e-05, %v74_v35  ;;  %v79_v38 = vadd.f32 1e-05, %v75_v36 }
 0x12d   :  { %v72_v39 = vpop.xlane.xlu1 %71 }
 0x12e   :  { %425 = vrsqrt.f32 %v78_v37  ;;  %v76_v40 = vmul.f32 0.03125, %v72_v39 }
 0x12f   :  { %427 = vrsqrt.f32 %v79_v38 }
 0x130   :  { %v80_v41 = vadd.f32 1e-05, %v76_v40 }
 0x132   :  { %429 = vrsqrt.f32 %v80_v41 }
 0x134   :  { %v424_v42 = vpop.eup %423 }
 0x135   :  { %v85_v43 = vmul.f32 %v424_v42, %v53_v12 }
 0x137   :  { %v96_v47 = vmul.f32 %v372_v44, %v85_v43 }
 0x138   :  { %v426_v45 = vpop.eup %425 }
 0x139   :  { %v428_v46 = vpop.eup %427  ;;  %v86_v48 = vmul.f32 %v426_v45, %v54_v20  ;;  %v107_v53 = vadd.f32 %v373_v49, %v96_v47 }
 0x13a   :  { %v87_v50 = vmul.f32 %v428_v46, %v55_v13 }
 0x13b   :  { %v97_v51 = vmul.f32 %v372_v44, %v86_v48 }
 0x13c   :  { %v430_v52 = vpop.eup %429  ;;  %v98_v55 = vmul.f32 %v372_v44, %v87_v50 }
 0x13d   :  { %v108_v54 = vadd.f32 %v373_v49, %v97_v51  ;;  %v88_v56 = vmul.f32 %v430_v52, %v56_v21 }
 0x13e   :  { %v109_v59 = vadd.f32 %v373_v49, %v98_v55 }
 0x13f   :  { %v111_v57 = vpack.c.bf16 %v108_v54, %v107_v53  ;;  %v99_v58 = vmul.f32 %v372_v44, %v88_v56  ;;  %v238_v56 = vld [vmem:[#allocation3 + $0x10] sm:$0xff] }
 0x141   :  { %113 = vst.msk [vmem:[#allocation2] sm:$0xff] %vm35_vm0, %v111_v57  ;;  %v110_v60 = vadd.f32 %v373_v49, %v99_v58  ;;  %v236_v57 = vld [vmem:[#allocation3] sm:$0xff] }
 0x143   :  { %v112_v61 = vpack.c.bf16 %v110_v60, %v109_v59  ;;  %v239_v59 = vld [vmem:[#allocation3 + $0x18] sm:$0xff] }
 0x145   :  { %114 = vst.msk [vmem:[#allocation2 + $0x8] sm:$0xff] %vm35_vm0, %v112_v61 }
 0x148   :  { %v119_v62 = vld [vmem:[#allocation2] sm:$0xff] }
 0x149   :  { %400 = vmatprep.mubr.msk.bf16.mxu0 %vm35_vm0, %v119_v62  ;;  %v237_v62 = vld [vmem:[#allocation3 + $0x8] sm:$0xff] }
 0x14c   :  { %v120_v63 = vld [vmem:[#allocation2 + $0x8] sm:$0xff] }
 0x14d   :  { %401 = vmatmul.mubr.msk.bf16.vlgmr.msra.gmra.mrb[0].mxu0 %vm35_vm0, %v120_v63 }
 0x220   :  { %v402_v10 = vpop.f32.mrb[0].mxu0 }
 0x221   :  { %v194_v11 = vadd.f32 %v402_v10, %v374_v9  ;;  %v185_v12 = vpop.f32.mrb[1].mxu0 }
 0x222   :  { %v186_v13 = vadd.f32 %v374_v9, %v185_v12  ;;  %v403_v14 = vpop.f32.mrb[2].mxu0 }
 0x223   :  { %v206_v15 = vmul.f32 0.044715, %v194_v11  ;;  %v197_v16 = vadd.f32 %v403_v14, %v374_v9  ;;  %v188_v17 = vpop.f32.mrb[3].mxu0  ;;  %v202_v44 = vmul.f32 0.5, %v194_v11 }
 0x224   :  { %v204_v18 = vmul.f32 0.044715, %v186_v13  ;;  %v189_v19 = vadd.f32 %v374_v9, %v188_v17  ;;  %v200_v47 = vmul.f32 0.5, %v186_v13  ;;  %v385_v9 = vld [vmem:[%s584_s6] ss:$0 sm:$0xff] }
 0x225   :  { %v210_v20 = vmul.f32 %v206_v15, %v194_v11  ;;  %v207_v21 = vmul.f32 0.044715, %v197_v16  ;;  %v203_v45 = vmul.f32 0.5, %v197_v16 }
 0x226   :  { %v208_v22 = vmul.f32 %v204_v18, %v186_v13  ;;  %v205_v23 = vmul.f32 0.044715, %v189_v19  ;;  %v201_v48 = vmul.f32 0.5, %v189_v19 }
 0x227   :  { %v214_v24 = vmul.f32 %v210_v20, %v194_v11  ;;  %v211_v25 = vmul.f32 %v207_v21, %v197_v16 }
 0x228   :  { %v209_v26 = vmul.f32 %v205_v23, %v189_v19  ;;  %v212_v27 = vmul.f32 %v208_v22, %v186_v13 }
 0x229   :  { %v218_v28 = vadd.f32 %v214_v24, %v194_v11  ;;  %v215_v29 = vmul.f32 %v211_v25, %v197_v16 }
 0x22a   :  { %v213_v30 = vmul.f32 %v209_v26, %v189_v19  ;;  %v216_v31 = vadd.f32 %v212_v27, %v186_v13 }
 0x22b   :  { %v222_v32 = vmul.f32 0.7978846, %v218_v28  ;;  %v219_v33 = vadd.f32 %v215_v29, %v197_v16 }
 0x22c   :  { %v217_v34 = vadd.f32 %v213_v30, %v189_v19  ;;  %v220_v35 = vmul.f32 0.7978846, %v216_v31 }
 0x22d   :  { %431 = vtanh.f32 %v222_v32  ;;  %v223_v36 = vmul.f32 0.7978846, %v219_v33 }
 0x22e   :  { %v221_v37 = vmul.f32 0.7978846, %v217_v34  ;;  %433 = vtanh.f32 %v220_v35 }
 0x22f   :  { %435 = vtanh.f32 %v223_v36 }
 0x230   :  { %437 = vtanh.f32 %v221_v37 }
 0x237   :  { %v432_v38 = vpop.eup %431 }
 0x238   :  { %v434_v39 = vpop.eup %433  ;;  %v230_v40 = vadd.f32 1.0, %v432_v38 }
 0x239   :  { %v436_v41 = vpop.eup %435  ;;  %v228_v42 = vadd.f32 1.0, %v434_v39 }
 0x23a   :  { %v438_v43 = vpop.eup %437  ;;  %v231_v46 = vadd.f32 1.0, %v436_v41  ;;  %v234_v50 = vmul.f32 %v230_v40, %v202_v44 }
 0x23b   :  { %v229_v49 = vadd.f32 1.0, %v438_v43  ;;  %v232_v52 = vmul.f32 %v228_v42, %v200_v47 }
 0x23c   :  { %v235_v51 = vmul.f32 %v231_v46, %v203_v45 }
 0x23d   :  { %v233_v53 = vmul.f32 %v229_v49, %v201_v48 }
 0x23e   :  { %v241_v54 = vpack.c.bf16 %v235_v51, %v234_v50 }
 0x23f   :  { %v240_v55 = vpack.c.bf16 %v233_v53, %v232_v52 }
 0x241   :  { %412 = vmatprep.mubr.msk.bf16.mxu1 %vm274_vm1, %v240_v55 }
 0x242   :  { %413 = vmatmul.mubr.msk.bf16.vlgmr.msra.gmra.mrb[0].mxu1 %vm274_vm1, %v241_v54 }
 0x315   :  { %v414_v58 = vpop.f32.mrb[0].mxu1 }
 0x316   :  { %v332_v60 = vadd.f32 %v414_v58, %v238_v56  ;;  %v315_v61 = vpop.f32.mrb[1].mxu1 }
 0x317   :  { %v330_v63 = vadd.f32 %v315_v61, %v236_v57  ;;  %v415_v3 = vpop.f32.mrb[2].mxu1 }
 0x318   :  { %336 = vst.msk [vmem:[#allocation3 + $0x10] sm:$0xff] %vm35_vm0, %v332_v60  ;;  %v333_v5 = vadd.f32 %v415_v3, %v239_v59  ;;  %v318_v6 = vpop.f32.mrb[3].mxu1 }
 0x319   :  { %334 = vst.msk [vmem:[#allocation3] sm:$0xff] %vm35_vm0, %v330_v63  ;;  %v331_v7 = vadd.f32 %v318_v6, %v237_v62 }
 0x31a   :  { %337 = vst.msk [vmem:[#allocation3 + $0x18] sm:$0xff] %vm35_vm0, %v333_v5 }
 0x31b   :  { %335 = vst.msk [vmem:[#allocation3 + $0x8] sm:$0xff] %vm35_vm0, %v331_v7 }
 0x31f   :  { %v347_v8 = vld [vmem:[#allocation3 + $0x10] sm:$0xff] }
 0x320   :  { %v351_v10 = vadd.f32 %v347_v8, %v493_v2  ;;  %v345_v11 = vld [vmem:[#allocation3] sm:$0xff] }
 0x321   :  { %v349_v12 = vadd.f32 %v345_v11, %v483_v0  ;;  %v348_v13 = vld [vmem:[#allocation3 + $0x18] sm:$0xff] }
 0x322   :  { %v362_v14 = vadd.f32 %v385_v9, %v351_v10  ;;  %v352_v15 = vadd.f32 %v348_v13, %v500_v4  ;;  %v346_v16 = vld [vmem:[#allocation3 + $0x8] sm:$0xff] }
 0x323   :  { %v360_v17 = vadd.f32 %v385_v9, %v349_v12  ;;  %v350_v18 = vadd.f32 %v346_v16, %v488_v1 }
 0x324   :  { %366 = vst.msk [vmem:[%s585_s7 + $0x10] sm:$0xff] %vm35_vm0, %v362_v14  ;;  %v363_v19 = vadd.f32 %v385_v9, %v352_v15 }
 0x325   :  { %364 = vst.msk [vmem:[%s585_s7] sm:$0xff] %vm35_vm0, %v360_v17  ;;  %v361_v0 = vadd.f32 %v385_v9, %v350_v18 }
 0x326   :  { %367 = vst.msk [vmem:[%s585_s7 + $0x18] sm:$0xff] %vm35_vm0, %v363_v19 }
 0x327   :  { %365 = vst.msk [vmem:[%s585_s7 + $0x8] sm:$0xff] %vm35_vm0, %v361_v0 }

</bundles_post_ra>
